<compile_context>
chip_gen: v7x
topology: tpu7x:2x2x1
jax: 0.10.0
libtpu: 0.0.40
codegen_flags: <defaults>
</compile_context>

<pallas_src>
import functools

import jax
import jax.numpy as jnp
from jax.experimental import pallas as pl
from jax.experimental.pallas import tpu as pltpu

_BN_EPS = 1e-3
_CFG = {}                 # memoized per-generation tiling config
_TAPS_OK = {"ok": None}   # memoized fused-tap self-test result


def _cdiv(a, b):
    return -(-a // b)


def _round_up(a, b):
    return _cdiv(a, b) * b


# ----------------------------------------------------------------------------
# Per-generation configuration
# ----------------------------------------------------------------------------
def _tpu_config():
    if _CFG:
        return _CFG
    kind = ""
    try:
        kind = jax.devices()[0].device_kind.lower()
    except Exception:
        pass
    vmem_cap = None
    try:
        vmem_cap = int(pltpu.get_tpu_info().vmem_capacity_bytes)
    except Exception:
        vmem_cap = None
    if vmem_cap is None:
        # v5e / v6e have 128 MiB VMEM; v7x (and unknown) -> conservative 64 MiB.
        vmem_cap = (128 if ("v5" in kind or "v6" in kind) else 64) * 2 ** 20
    wide_mxu = "v5" not in kind            # v6e / v7x: 256-wide MXU N dim
    if vmem_cap >= 100 * 2 ** 20:
        _CFG.update(lane_chunk=256 if wide_mxu else 128, target_rows=2048,
                    block_budget=40 * 2 ** 20, vmem_limit=96 * 2 ** 20)
    else:
        _CFG.update(lane_chunk=256 if wide_mxu else 128, target_rows=1024,
                    block_budget=18 * 2 ** 20, vmem_limit=48 * 2 ** 20)
    return _CFG


# ----------------------------------------------------------------------------
# Pallas kernel: fused 3x3 conv (tap matmuls) + folded BN (+ReLU) (+attention)
# ----------------------------------------------------------------------------
def _conv_taps_bn_kernel(taps, thw, chunk, cpad, relu, fused_mask, *refs):
    """x_ref: (1, FLAT, K) bf16  — tap t is the contiguous slice [off_t, off_t+thw).
    w_ref: (n_taps, K, Cpad) bf16 — VMEM-resident, BN-scale-folded weights.
    b_ref: (1, Cpad) f32          — VMEM-resident folded BN bias.
    m_ref: (1, thw, Cpad) bf16    — optional residual-attention mask tile.
    o_ref: (1, thw, Cpad)         — lane-dense output tile (f32 or bf16)."""
    if fused_mask:
        x_ref, w_ref, b_ref, m_ref, o_ref = refs
    else:
        x_ref, w_ref, b_ref, o_ref = refs

    for c0 in range(0, cpad, chunk):           # static in-kernel channel chunks
        cw = min(chunk, cpad - c0)
        acc = None
        for t, off in enumerate(taps):
            part = jnp.dot(x_ref[0, off:off + thw, :],
                           w_ref[t, :, c0:c0 + cw],
                           preferred_element_type=jnp.float32)
            acc = part if acc is None else acc + part
        y = acc + b_ref[:, c0:c0 + cw]         # f32 epilogue
        if relu:
            y = jnp.maximum(y, 0.0)
        if fused_mask:
            y = y * (1.0 + jax.nn.sigmoid(
                m_ref[0, :, c0:c0 + cw].astype(jnp.float32)))
        o_ref[0, :, c0:c0 + cw] = y.astype(o_ref.dtype)


# ----------------------------------------------------------------------------
# Tile-size choice (per-generation VMEM budget; >= 4 bands when possible)
# ----------------------------------------------------------------------------
def _choose_tile_rows(ho, wph, nphase, cin, cpad, cfg, out_bytes, has_mask):
    def footprint(th):
        x_band = nphase * (th + 3) * wph * cin * 2
        o_blk = th * wph * cpad * out_bytes
        m_blk = th * wph * cpad * 2 if has_mask else 0
        return 2 * (x_band + o_blk + m_blk)    # double-buffered streams

    th = max(1, ho)
    while th > 1 and footprint(th) > cfg["block_budget"]:
        th = (th + 1) // 2
    th = min(th, max(1, _cdiv(ho, 4)))         # keep >=4 bands (pipelining/2 TCs)
    return max(th, 1)


# ----------------------------------------------------------------------------
# Fused-tap packing (primary layout for Cin >= 64)
# ----------------------------------------------------------------------------
def _build_tap_operands(x_nhwc, stride, wph, th):
    N, H, W, Cin = x_nhwc.shape
    Ho = (H - 1) // stride + 1
    Wo = (W - 1) // stride + 1
    nphase = 1 if stride == 1 else 4
    n_bands = _cdiv(Ho, th)
    Ho_pad = n_bands * th
    BR = th + 3 if stride == 1 else th + 2     # band rows (halo incl.)

    xb = x_nhwc.astype(jnp.bfloat16)
    if stride == 1:
        rows = (n_bands - 1) * th + BR
        xp = jnp.pad(xb, ((0, 0), (1, rows - 1 - H), (1, wph - 1 - W), (0, 0)))
        phases = [xp]
    else:
        prow = Ho_pad + 2
        xp = jnp.pad(xb, ((0, 0), (1, 2 * prow - 1 - H),
                          (1, 2 * wph - 1 - W), (0, 0)))
        phases = [xp[:, p::2, q::2, :] for p in range(2) for q in range(2)]

    bands = [jnp.stack([ph[:, t * th:t * th + BR] for t in range(n_bands)], axis=1)
             for ph in phases]
    # (N, n_bands, nphase, BR, Wph, Cin) -> (N*n_bands, nphase*BR*Wph, Cin)
    xop = jnp.stack(bands, axis=2).reshape(N * n_bands, nphase * BR * wph, Cin)

    taps = []
    for kh in range(3):
        for kw in range(3):
            if stride == 1:
                taps.append(kh * wph + kw)
            else:
                p, a = kh % 2, kh // 2
                q, b = kw % 2, kw // 2
                taps.append((2 * p + q) * BR * wph + a * wph + b)

    meta = dict(N=N, Ho=Ho, Wo=Wo, Wph=wph, TH=th, n_bands=n_bands, Ho_pad=Ho_pad)
    return xop, tuple(taps), th * wph, meta


def _tile_mask_taps(mask_nhwc, cpad, meta):
    N, Ho, Wo = meta["N"], meta["Ho"], meta["Wo"]
    Wph, TH, nb, Ho_pad = meta["Wph"], meta["TH"], meta["n_bands"], meta["Ho_pad"]
    C = mask_nhwc.shape[-1]
    m = jnp.pad(mask_nhwc.astype(jnp.bfloat16),
                ((0, 0), (0, Ho_pad - Ho), (0, Wph - Wo), (0, cpad - C)))
    return m.reshape(N * nb, TH * Wph, cpad)


def _unpack_taps(out, cout, meta):
    N, Ho, Wo = meta["N"], meta["Ho"], meta["Wo"]
    Wph, TH, nb, Ho_pad = meta["Wph"], meta["TH"], meta["n_bands"], meta["Ho_pad"]
    out = out.reshape(N, nb, TH, Wph, out.shape[-1])[:, :, :, :Wo, :cout]
    return out.reshape(N, Ho_pad, Wo, cout)[:, :Ho]


# ----------------------------------------------------------------------------
# im2col layout (small-Cin layers: one K=9*Cin matmul keeps the MXU fed)
# ----------------------------------------------------------------------------
def _build_im2col_operands(x_nhwc, stride, cfg):
    N, H, W, Cin = x_nhwc.shape
    Ho = (H - 1) // stride + 1
    Wo = (W - 1) // stride + 1
    xp = jnp.pad(x_nhwc.astype(jnp.bfloat16), ((0, 0), (1, 1), (1, 1), (0, 0)))
    cols = [xp[:, kh:kh + stride * (Ho - 1) + 1:stride,
               kw:kw + stride * (Wo - 1) + 1:stride, :]
            for kh in range(3) for kw in range(3)]
    patches = jnp.concatenate(cols, axis=-1).reshape(N * Ho * Wo, 9 * Cin)
    M = N * Ho * Wo
    TM = min(cfg["target_rows"], _round_up(M, 16))
    Mt = _cdiv(M, TM)
    Mpad = Mt * TM
    patches = jnp.pad(patches, ((0, Mpad - M), (0, 0))).reshape(Mt, TM, 9 * Cin)
    meta = dict(N=N, Ho=Ho, Wo=Wo, M=M, TM=TM, Mt=Mt, Mpad=Mpad)
    return patches, (0,), TM, meta


def _tile_mask_im2col(mask_nhwc, cpad, meta):
    C = mask_nhwc.shape[-1]
    m = mask_nhwc.astype(jnp.bfloat16).reshape(
        meta["N"] * meta["Ho"] * meta["Wo"], C)
    m = jnp.pad(m, ((0, meta["Mpad"] - meta["M"]), (0, cpad - C)))
    return m.reshape(meta["Mt"], meta["TM"], cpad)


def _unpack_im2col(out, cout, meta):
    out = out.reshape(meta["Mpad"], out.shape[-1])[:meta["M"], :cout]
    return out.reshape(meta["N"], meta["Ho"], meta["Wo"], cout)


# ----------------------------------------------------------------------------
# pallas_call wrapper
# ----------------------------------------------------------------------------
def _conv_impl(x_nhwc, prep, *, stride, relu, fuse_mask, mode, out_dtype, cfg,
               force_th=None):
    cin, cout, cpad = prep["cin"], prep["cout"], prep["cpad"]
    wop9, bop = prep["wop"], prep["bop"]
    out_bytes = jnp.dtype(out_dtype).itemsize
    chunk = min(cfg["lane_chunk"], cpad)

    if mode == "taps":
        N, H, W, _ = x_nhwc.shape
        Ho = (H - 1) // stride + 1
        Wo = (W - 1) // stride + 1
        Wph = _round_up(Wo + 2, 16)            # lane/sublane-friendly row pitch
        nphase = 1 if stride == 1 else 4
        th = force_th if force_th else _choose_tile_rows(
            Ho, Wph, nphase, cin, cpad, cfg, out_bytes, fuse_mask is not None)
        xop, taps, thw, meta = _build_tap_operands(x_nhwc, stride, Wph, th)
        wop = wop9                              # (9, Cin, Cpad)
        mop = None if fuse_mask is None else _tile_mask_taps(fuse_mask, cpad, meta)
        unpack = _unpack_taps
    else:
        xop, taps, thw, meta = _build_im2col_operands(x_nhwc, stride, cfg)
        wop = wop9.reshape(1, 9 * cin, cpad)    # (1, 9*Cin, Cpad)
        mop = None if fuse_mask is None else _tile_mask_im2col(fuse_mask, cpad, meta)
        unpack = _unpack_im2col

    Mt, FLAT, K = xop.shape
    n_taps = wop.shape[0]

    kernel = functools.partial(_conv_taps_bn_kernel, taps, thw, chunk, cpad,
                               relu, fuse_mask is not None)

    in_specs = [
        pl.BlockSpec((1, FLAT, K), lambda i: (i, 0, 0)),
        pl.BlockSpec((n_taps, K, cpad), lambda i: (0, 0, 0)),   # resident weights
        pl.BlockSpec((1, cpad), lambda i: (0, 0)),              # resident bias
    ]
    args = [xop, wop, bop]
    if mop is not None:
        in_specs.append(pl.BlockSpec((1, thw, cpad), lambda i: (i, 0, 0)))
        args.append(mop)

    flops = 2 * Mt * thw * (len(taps) * K) * cpad
    transc = Mt * thw * cpad if mop is not None else 0
    bytes_acc = (xop.size * 2 + wop.size * 2 + bop.size * 4
                 + (mop.size * 2 if mop is not None else 0)
                 + Mt * thw * cpad * out_bytes)

    out = pl.pallas_call(
        kernel,
        out_shape=jax.ShapeDtypeStruct((Mt, thw, cpad), out_dtype),
        grid=(Mt,),
        in_specs=in_specs,
        out_specs=pl.BlockSpec((1, thw, cpad), lambda i: (i, 0, 0)),
        compiler_params=pltpu.CompilerParams(
            dimension_semantics=("parallel",),
            vmem_limit_bytes=cfg["vmem_limit"]),
        cost_estimate=pl.CostEstimate(
            flops=int(flops), transcendentals=int(transc),
            bytes_accessed=int(bytes_acc)),
    )(*args)
    return unpack(out, cout, meta)


# ----------------------------------------------------------------------------
# Pure-JAX reference (for self-test and end-to-end validation)
# ----------------------------------------------------------------------------
def _conv3x3_ref(x, w, scale, bias, *, stride, relu, mask=None):
    N, H, W, Cin = x.shape
    Ho = (H - 1) // stride + 1
    Wo = (W - 1) // stride + 1
    xp = jnp.pad(x.astype(jnp.float32), ((0, 0), (1, 1), (1, 1), (0, 0)))
    acc = jnp.zeros((N, Ho, Wo, w.shape[-1]), jnp.float32)
    for kh in range(3):
        for kw in range(3):
            tap = xp[:, kh:kh + stride * (Ho - 1) + 1:stride,
                     kw:kw + stride * (Wo - 1) + 1:stride, :]
            acc = acc + jnp.einsum("nhwc,co->nhwo", tap, w[kh, kw])
    y = acc * scale + bias
    if relu:
        y = jnp.maximum(y, 0.0)
    if mask is not None:
        y = y * jax.nn.sigmoid(mask) + y
    return y


def _taps_path_ok(cfg):
    """Validate the fused-tap kernel (multi-band, multi-chunk, stride 1&2, bf16
    out, fused mask) once; fall back to im2col if it fails to lower/match."""
    if _TAPS_OK["ok"] is not None:
        return _TAPS_OK["ok"]
    ok = True
    try:
        key = jax.random.PRNGKey(123)
        kx, kw_, km = jax.random.split(key, 3)
        cin, cout = 8, 160                      # Cpad=256 -> two channel chunks
        x = jax.random.normal(kx, (1, 11, 13, cin), jnp.float32)
        w = 0.1 * jax.random.normal(kw_, (3, 3, cin, cout), jnp.float32)
        scale = jnp.linspace(0.8, 1.2, cout).astype(jnp.float32)
        bias = jnp.linspace(-0.1, 0.1, cout).astype(jnp.float32)
        prep = prep_conv_bn(w, scale, bias)
        for stride, th in ((1, 3), (2, 2)):     # tiny TH forces multiple bands
            ho = (11 - 1) // stride + 1
            wo = (13 - 1) // stride + 1
            mask = jax.random.normal(
                km, (1, ho, wo, cout), jnp.float32).astype(jnp.bfloat16)
            got = _conv_impl(x, prep, stride=stride, relu=True, fuse_mask=mask,
                             mode="taps", out_dtype=jnp.bfloat16, cfg=cfg,
                             force_th=th).astype(jnp.float32)
            want = _conv3x3_ref(x, w, scale, bias, stride=stride, relu=True,
                                mask=mask.astype(jnp.float32))
            if not bool(jnp.allclose(got, want, rtol=6e-2, atol=6e-2)):
                ok = False
                break
    except Exception:
        ok = False                               # lowering failure -> fallback
    _TAPS_OK["ok"] = ok
    return ok


# ----------------------------------------------------------------------------
# Public conv entry point
# ----------------------------------------------------------------------------
def conv3x3_bn(x_nhwc, prep, *, stride, relu, fuse_mask=None,
               out_dtype=jnp.float32, cfg=None):
    cfg = cfg or _tpu_config()
    if prep["cin"] < 64 or not _taps_path_ok(cfg):
        mode = "im2col"
    else:
        mode = "taps"
    return _conv_impl(x_nhwc, prep, stride=stride, relu=relu,
                      fuse_mask=fuse_mask, mode=mode, out_dtype=out_dtype,
                      cfg=cfg)


# ----------------------------------------------------------------------------
# Parameters: raw init + one-time preparation (fold BN, pad, cast to bf16)
# ----------------------------------------------------------------------------
def _conv_bn_params(key, cin, cout):
    kw_, kg, kb, km, kv = jax.random.split(key, 5)
    w = 0.1 * jax.random.normal(kw_, (3, 3, cin, cout), dtype=jnp.float32)
    gamma = 1.0 + 0.1 * jax.random.normal(kg, (cout,), jnp.float32)
    beta = 0.1 * jax.random.normal(kb, (cout,), jnp.float32)
    running_mean = 0.1 * jax.random.normal(km, (cout,), jnp.float32)
    running_var = jnp.abs(1.0 + 0.1 * jax.random.normal(kv, (cout,), jnp.float32)) + 0.1
    scale = gamma / jnp.sqrt(running_var + _BN_EPS)
    bias = beta - running_mean * scale
    return (w, scale, bias)


def init_params(key, in_channels, out_channels, layer_nums):
    in_filters = [in_channels] + list(out_channels[:-1])
    params = {"blocks": [], "mask_trunk": [], "mask_head": []}
    k = key
    for i, ln in enumerate(layer_nums):
        layers = []
        k, sub = jax.random.split(k)
        layers.append(_conv_bn_params(sub, in_filters[i], out_channels[i]))
        for _ in range(ln):
            k, sub = jax.random.split(k)
            layers.append(_conv_bn_params(sub, out_channels[i], out_channels[i]))
        params["blocks"].append(layers)
    k, sub = jax.random.split(k)
    params["mask_first"] = _conv_bn_params(sub, in_channels, out_channels[0])
    for i in range(1, len(out_channels)):
        k, sub = jax.random.split(k)
        params["mask_trunk"].append(
            _conv_bn_params(sub, out_channels[i - 1], out_channels[i]))
    for i in range(len(out_channels)):
        k, sub = jax.random.split(k)
        params["mask_head"].append(
            _conv_bn_params(sub, out_channels[i], out_channels[i]))
    return params


def prep_conv_bn(w, scale, bias):
    """One-time host-side prep: fold BN scale, pad Cout to 128, cast to bf16."""
    cin, cout = w.shape[2], w.shape[3]
    cpad = _round_up(cout, 128)
    wf = w.astype(jnp.float32) * scale.astype(jnp.float32)[None, None, None, :]
    wf = jnp.pad(wf, ((0, 0), (0, 0), (0, 0), (0, cpad - cout)))
    wop = wf.reshape(9, cin, cpad).astype(jnp.bfloat16)
    bop = jnp.pad(bias.astype(jnp.float32), (0, cpad - cout)).reshape(1, cpad)
    return dict(wop=wop, bop=bop, cin=cin, cout=cout, cpad=cpad)


def prepare_params(raw):
    return {
        "blocks": [[prep_conv_bn(*l) for l in blk] for blk in raw["blocks"]],
        "mask_first": prep_conv_bn(*raw["mask_first"]),
        "mask_trunk": [prep_conv_bn(*l) for l in raw["mask_trunk"]],
        "mask_head": [prep_conv_bn(*l) for l in raw["mask_head"]],
    }


# ----------------------------------------------------------------------------
# Forward pass (mirrors SECONDRanMask.forward)
# ----------------------------------------------------------------------------
def second_ran_mask_forward(x_nchw, prep_params, layer_strides):
    cfg = _tpu_config()
    num_stages = len(prep_params["blocks"])
    x = jnp.transpose(x_nchw, (0, 2, 3, 1)).astype(jnp.float32)   # NCHW -> NHWC

    # soft_mask_block: conv(stride 2)+BN+ReLU, then (approximate) SoftMask
    # producing one bf16 mask per stage, shape-matched to each block output.
    t = conv3x3_bn(x, prep_params["mask_first"], stride=2, relu=True,
                   out_dtype=jnp.bfloat16, cfg=cfg)
    masks = []
    for i in range(num_stages):
        if i > 0:
            t = conv3x3_bn(t, prep_params["mask_trunk"][i - 1], stride=2,
                           relu=True, out_dtype=jnp.bfloat16, cfg=cfg)
        masks.append(conv3x3_bn(t, prep_params["mask_head"][i], stride=1,
                                relu=False, out_dtype=jnp.bfloat16, cfg=cfg))

    # main blocks; x*sigmoid(mask_i)+x fused into the last conv of each stage
    outs = []
    h = x
    for i in range(num_stages):
        layers = prep_params["blocks"][i]
        for j, lp in enumerate(layers):
            last = (j == len(layers) - 1)
            h = conv3x3_bn(
                h, lp,
                stride=layer_strides[i] if j == 0 else 1,
                relu=True,
                fuse_mask=masks[i] if last else None,
                out_dtype=jnp.float32 if last else jnp.bfloat16,
                cfg=cfg)
        outs.append(h)

    outs_nchw = [jnp.transpose(o, (0, 3, 1, 2)) for o in outs]
    masks_nchw = [jnp.transpose(m.astype(jnp.float32), (0, 3, 1, 2))
                  for m in masks]
    return outs_nchw, masks_nchw


def _forward_ref(x_nchw, raw, layer_strides):
    """Pure-JAX f32 reference of the whole forward (for validation only)."""
    x = jnp.transpose(x_nchw, (0, 2, 3, 1)).astype(jnp.float32)
    t = _conv3x3_ref(x, *raw["mask_first"], stride=2, relu=True)
    masks = []
    for i in range(len(raw["blocks"])):
        if i > 0:
            t = _conv3x3_ref(t, *raw["mask_trunk"][i - 1], stride=2, relu=True)
        masks.append(_conv3x3_ref(t, *raw["mask_head"][i], stride=1, relu=False))
    outs = []
    h = x
    for i, layers in enumerate(raw["blocks"]):
        for j, lp in enumerate(layers):
            h = _conv3x3_ref(h, *lp, stride=layer_strides[i] if j == 0 else 1,
                             relu=True,
                             mask=masks[i] if j == len(layers) - 1 else None)
        outs.append(h)
    return ([jnp.transpose(o, (0, 3, 1, 2)) for o in outs],
            [jnp.transpose(m, (0, 3, 1, 2)) for m in masks])


def _rel_err(a, b):
    a = jnp.asarray(a, jnp.float32).ravel()
    b = jnp.asarray(b, jnp.float32).ravel()
    return float(jnp.linalg.norm(a - b) / (jnp.linalg.norm(b) + 1e-6))


# ----------------------------------------------------------------------------
if __name__ == "__main__":
    # Small config consistent with the module (scaled down from 128/[128,128,256]).
    in_channels = 4
    out_channels = [8, 8, 16]
    layer_nums = [2, 2, 2]
    layer_strides = [2, 2, 2]
    N, H, W = 2, 16, 16

    key = jax.random.PRNGKey(0)
    key, pkey, xkey = jax.random.split(key, 3)
    raw_params = init_params(pkey, in_channels, out_channels, layer_nums)
    params = prepare_params(raw_params)
    x = jax.random.normal(xkey, (N, in_channels, H, W), dtype=jnp.float32)

    cfg = _tpu_config()
    # Exercise + validate the fused-tap kernel path (multi-band, multi-chunk,
    # stride 1 & 2, bf16 out, fused mask).  Non-fatal: falls back to im2col.
    _taps_path_ok(cfg)

    outs, masks = second_ran_mask_forward(x, params, layer_strides)
    for o in outs:
        jax.block_until_ready(o)
    for m in masks:
        jax.block_until_ready(m)

    # sanity: shapes follow the stage strides
    expected = [(N, out_channels[i], H >> (i + 1), W >> (i + 1))
                for i in range(len(out_channels))]
    assert [tuple(o.shape) for o in outs] == expected, [o.shape for o in outs]
    assert [tuple(m.shape) for m in masks] == expected, [m.shape for m in masks]

    # numeric check vs pure-JAX f32 reference (bf16 quantization tolerance)
    ref_outs, ref_masks = _forward_ref(x, raw_params, layer_strides)
    for o, r in zip(outs, ref_outs):
        assert _rel_err(o, r) < 0.1, _rel_err(o, r)
    for m, r in zip(masks, ref_masks):
        assert _rel_err(m, r) < 0.1, _rel_err(m, r)

    print("KERNEL_OK")
</pallas_src>

<mosaic_0001>
module attributes {stable_mosaic.version = 11 : i64} {
  func.func @_conv_taps_bn_kernel(%arg0: i32, %arg1: memref<1x96x8xbf16, #tpu.memory_space<vmem>>, %arg2: memref<9x8x256xbf16, #tpu.memory_space<vmem>>, %arg3: memref<1x256xf32, #tpu.memory_space<vmem>>, %arg4: memref<1x48x256xbf16, #tpu.memory_space<vmem>>, %arg5: memref<1x48x256xbf16, #tpu.memory_space<vmem>>) attributes {dimension_semantics = [#tpu.dimension_semantics<parallel>], iteration_bounds = array<i64: 4>, scalar_prefetch = 0 : i64, scratch_operands = 0 : i64, tpu.core_type = #tpu.core_type<tc>, window_params = [{transform_indices = @transform_0, window_bounds = array<i64: 1, 96, 8>}, {pipeline_mode = #tpu.pipeline_mode<synchronous>, transform_indices = @transform_1, window_bounds = array<i64: 9, 8, 256>}, {pipeline_mode = #tpu.pipeline_mode<synchronous>, transform_indices = @transform_2, window_bounds = array<i64: 1, 256>}, {transform_indices = @transform_3, window_bounds = array<i64: 1, 48, 256>}, {transform_indices = @transform_4, window_bounds = array<i64: 1, 48, 256>}]} {
    %c0 = arith.constant 0 : index
    %c0_0 = arith.constant 0 : index
    %c0_1 = arith.constant 0 : index
    %0 = vector.load %arg1[%c0, %c0_0, %c0_1] : memref<1x96x8xbf16, #tpu.memory_space<vmem>>, vector<1x48x8xbf16>
    %1 = vector.shape_cast %0 : vector<1x48x8xbf16> to vector<48x8xbf16>
    %c0_2 = arith.constant 0 : index
    %c0_3 = arith.constant 0 : index
    %c0_4 = arith.constant 0 : index
    %2 = vector.load %arg2[%c0_2, %c0_3, %c0_4] : memref<9x8x256xbf16, #tpu.memory_space<vmem>>, vector<1x8x256xbf16>
    %3 = vector.shape_cast %2 : vector<1x8x256xbf16> to vector<8x256xbf16>
    %cst = arith.constant dense<0.000000e+00> : vector<48x256xf32>
    %4 = tpu.matmul %1, %3, %cst {dimension_numbers = #tpu.dot_dimension_numbers<[1], [0], [0], [1], [0, 0, 1, 1], [], []>} : vector<48x8xbf16>, vector<8x256xbf16>, vector<48x256xf32> -> vector<48x256xf32>
    %c0_5 = arith.constant 0 : index
    %c1 = arith.constant 1 : index
    %c0_6 = arith.constant 0 : index
    %5 = vector.load %arg1[%c0_5, %c1, %c0_6] : memref<1x96x8xbf16, #tpu.memory_space<vmem>>, vector<1x48x8xbf16>
    %6 = vector.shape_cast %5 : vector<1x48x8xbf16> to vector<48x8xbf16>
    %c1_7 = arith.constant 1 : index
    %c0_8 = arith.constant 0 : index
    %c0_9 = arith.constant 0 : index
    %7 = vector.load %arg2[%c1_7, %c0_8, %c0_9] : memref<9x8x256xbf16, #tpu.memory_space<vmem>>, vector<1x8x256xbf16>
    %8 = vector.shape_cast %7 : vector<1x8x256xbf16> to vector<8x256xbf16>
    %cst_10 = arith.constant dense<0.000000e+00> : vector<48x256xf32>
    %9 = tpu.matmul %6, %8, %cst_10 {dimension_numbers = #tpu.dot_dimension_numbers<[1], [0], [0], [1], [0, 0, 1, 1], [], []>} : vector<48x8xbf16>, vector<8x256xbf16>, vector<48x256xf32> -> vector<48x256xf32>
    %10 = arith.addf %4, %9 : vector<48x256xf32>
    %c0_11 = arith.constant 0 : index
    %c2 = arith.constant 2 : index
    %c0_12 = arith.constant 0 : index
    %11 = vector.load %arg1[%c0_11, %c2, %c0_12] : memref<1x96x8xbf16, #tpu.memory_space<vmem>>, vector<1x48x8xbf16>
    %12 = vector.shape_cast %11 : vector<1x48x8xbf16> to vector<48x8xbf16>
    %c2_13 = arith.constant 2 : index
    %c0_14 = arith.constant 0 : index
    %c0_15 = arith.constant 0 : index
    %13 = vector.load %arg2[%c2_13, %c0_14, %c0_15] : memref<9x8x256xbf16, #tpu.memory_space<vmem>>, vector<1x8x256xbf16>
    %14 = vector.shape_cast %13 : vector<1x8x256xbf16> to vector<8x256xbf16>
    %cst_16 = arith.constant dense<0.000000e+00> : vector<48x256xf32>
    %15 = tpu.matmul %12, %14, %cst_16 {dimension_numbers = #tpu.dot_dimension_numbers<[1], [0], [0], [1], [0, 0, 1, 1], [], []>} : vector<48x8xbf16>, vector<8x256xbf16>, vector<48x256xf32> -> vector<48x256xf32>
    %16 = arith.addf %10, %15 : vector<48x256xf32>
    %c0_17 = arith.constant 0 : index
    %c16 = arith.constant 16 : index
    %c0_18 = arith.constant 0 : index
    %17 = vector.load %arg1[%c0_17, %c16, %c0_18] : memref<1x96x8xbf16, #tpu.memory_space<vmem>>, vector<1x48x8xbf16>
    %18 = vector.shape_cast %17 : vector<1x48x8xbf16> to vector<48x8xbf16>
    %c3 = arith.constant 3 : index
    %c0_19 = arith.constant 0 : index
    %c0_20 = arith.constant 0 : index
    %19 = vector.load %arg2[%c3, %c0_19, %c0_20] : memref<9x8x256xbf16, #tpu.memory_space<vmem>>, vector<1x8x256xbf16>
    %20 = vector.shape_cast %19 : vector<1x8x256xbf16> to vector<8x256xbf16>
    %cst_21 = arith.constant dense<0.000000e+00> : vector<48x256xf32>
    %21 = tpu.matmul %18, %20, %cst_21 {dimension_numbers = #tpu.dot_dimension_numbers<[1], [0], [0], [1], [0, 0, 1, 1], [], []>} : vector<48x8xbf16>, vector<8x256xbf16>, vector<48x256xf32> -> vector<48x256xf32>
    %22 = arith.addf %16, %21 : vector<48x256xf32>
    %c0_22 = arith.constant 0 : index
    %c17 = arith.constant 17 : index
    %c0_23 = arith.constant 0 : index
    %23 = vector.load %arg1[%c0_22, %c17, %c0_23] : memref<1x96x8xbf16, #tpu.memory_space<vmem>>, vector<1x48x8xbf16>
    %24 = vector.shape_cast %23 : vector<1x48x8xbf16> to vector<48x8xbf16>
    %c4 = arith.constant 4 : index
    %c0_24 = arith.constant 0 : index
    %c0_25 = arith.constant 0 : index
    %25 = vector.load %arg2[%c4, %c0_24, %c0_25] : memref<9x8x256xbf16, #tpu.memory_space<vmem>>, vector<1x8x256xbf16>
    %26 = vector.shape_cast %25 : vector<1x8x256xbf16> to vector<8x256xbf16>
    %cst_26 = arith.constant dense<0.000000e+00> : vector<48x256xf32>
    %27 = tpu.matmul %24, %26, %cst_26 {dimension_numbers = #tpu.dot_dimension_numbers<[1], [0], [0], [1], [0, 0, 1, 1], [], []>} : vector<48x8xbf16>, vector<8x256xbf16>, vector<48x256xf32> -> vector<48x256xf32>
    %28 = arith.addf %22, %27 : vector<48x256xf32>
    %c0_27 = arith.constant 0 : index
    %c18 = arith.constant 18 : index
    %c0_28 = arith.constant 0 : index
    %29 = vector.load %arg1[%c0_27, %c18, %c0_28] : memref<1x96x8xbf16, #tpu.memory_space<vmem>>, vector<1x48x8xbf16>
    %30 = vector.shape_cast %29 : vector<1x48x8xbf16> to vector<48x8xbf16>
    %c5 = arith.constant 5 : index
    %c0_29 = arith.constant 0 : index
    %c0_30 = arith.constant 0 : index
    %31 = vector.load %arg2[%c5, %c0_29, %c0_30] : memref<9x8x256xbf16, #tpu.memory_space<vmem>>, vector<1x8x256xbf16>
    %32 = vector.shape_cast %31 : vector<1x8x256xbf16> to vector<8x256xbf16>
    %cst_31 = arith.constant dense<0.000000e+00> : vector<48x256xf32>
    %33 = tpu.matmul %30, %32, %cst_31 {dimension_numbers = #tpu.dot_dimension_numbers<[1], [0], [0], [1], [0, 0, 1, 1], [], []>} : vector<48x8xbf16>, vector<8x256xbf16>, vector<48x256xf32> -> vector<48x256xf32>
    %34 = arith.addf %28, %33 : vector<48x256xf32>
    %c0_32 = arith.constant 0 : index
    %c32 = arith.constant 32 : index
    %c0_33 = arith.constant 0 : index
    %35 = vector.load %arg1[%c0_32, %c32, %c0_33] : memref<1x96x8xbf16, #tpu.memory_space<vmem>>, vector<1x48x8xbf16>
    %36 = vector.shape_cast %35 : vector<1x48x8xbf16> to vector<48x8xbf16>
    %c6 = arith.constant 6 : index
    %c0_34 = arith.constant 0 : index
    %c0_35 = arith.constant 0 : index
    %37 = vector.load %arg2[%c6, %c0_34, %c0_35] : memref<9x8x256xbf16, #tpu.memory_space<vmem>>, vector<1x8x256xbf16>
    %38 = vector.shape_cast %37 : vector<1x8x256xbf16> to vector<8x256xbf16>
    %cst_36 = arith.constant dense<0.000000e+00> : vector<48x256xf32>
    %39 = tpu.matmul %36, %38, %cst_36 {dimension_numbers = #tpu.dot_dimension_numbers<[1], [0], [0], [1], [0, 0, 1, 1], [], []>} : vector<48x8xbf16>, vector<8x256xbf16>, vector<48x256xf32> -> vector<48x256xf32>
    %40 = arith.addf %34, %39 : vector<48x256xf32>
    %c0_37 = arith.constant 0 : index
    %c33 = arith.constant 33 : index
    %c0_38 = arith.constant 0 : index
    %41 = vector.load %arg1[%c0_37, %c33, %c0_38] : memref<1x96x8xbf16, #tpu.memory_space<vmem>>, vector<1x48x8xbf16>
    %42 = vector.shape_cast %41 : vector<1x48x8xbf16> to vector<48x8xbf16>
    %c7 = arith.constant 7 : index
    %c0_39 = arith.constant 0 : index
    %c0_40 = arith.constant 0 : index
    %43 = vector.load %arg2[%c7, %c0_39, %c0_40] : memref<9x8x256xbf16, #tpu.memory_space<vmem>>, vector<1x8x256xbf16>
    %44 = vector.shape_cast %43 : vector<1x8x256xbf16> to vector<8x256xbf16>
    %cst_41 = arith.constant dense<0.000000e+00> : vector<48x256xf32>
    %45 = tpu.matmul %42, %44, %cst_41 {dimension_numbers = #tpu.dot_dimension_numbers<[1], [0], [0], [1], [0, 0, 1, 1], [], []>} : vector<48x8xbf16>, vector<8x256xbf16>, vector<48x256xf32> -> vector<48x256xf32>
    %46 = arith.addf %40, %45 : vector<48x256xf32>
    %c0_42 = arith.constant 0 : index
    %c34 = arith.constant 34 : index
    %c0_43 = arith.constant 0 : index
    %47 = vector.load %arg1[%c0_42, %c34, %c0_43] : memref<1x96x8xbf16, #tpu.memory_space<vmem>>, vector<1x48x8xbf16>
    %48 = vector.shape_cast %47 : vector<1x48x8xbf16> to vector<48x8xbf16>
    %c8 = arith.constant 8 : index
    %c0_44 = arith.constant 0 : index
    %c0_45 = arith.constant 0 : index
    %49 = vector.load %arg2[%c8, %c0_44, %c0_45] : memref<9x8x256xbf16, #tpu.memory_space<vmem>>, vector<1x8x256xbf16>
    %50 = vector.shape_cast %49 : vector<1x8x256xbf16> to vector<8x256xbf16>
    %cst_46 = arith.constant dense<0.000000e+00> : vector<48x256xf32>
    %51 = tpu.matmul %48, %50, %cst_46 {dimension_numbers = #tpu.dot_dimension_numbers<[1], [0], [0], [1], [0, 0, 1, 1], [], []>} : vector<48x8xbf16>, vector<8x256xbf16>, vector<48x256xf32> -> vector<48x256xf32>
    %52 = arith.addf %46, %51 : vector<48x256xf32>
    %c0_47 = arith.constant 0 : index
    %c0_48 = arith.constant 0 : index
    %53 = vector.load %arg3[%c0_47, %c0_48] : memref<1x256xf32, #tpu.memory_space<vmem>>, vector<1x256xf32>
    %54 = vector.broadcast %53 : vector<1x256xf32> to vector<48x256xf32>
    %55 = arith.addf %52, %54 : vector<48x256xf32>
    %cst_49 = arith.constant 0.000000e+00 : f32
    %56 = vector.broadcast %cst_49 : f32 to vector<48x256xf32>
    %57 = arith.maximumf %55, %56 : vector<48x256xf32>
    %c0_50 = arith.constant 0 : index
    %c0_51 = arith.constant 0 : index
    %c0_52 = arith.constant 0 : index
    %58 = vector.load %arg4[%c0_50, %c0_51, %c0_52] : memref<1x48x256xbf16, #tpu.memory_space<vmem>>, vector<1x48x256xbf16>
    %59 = vector.shape_cast %58 : vector<1x48x256xbf16> to vector<48x256xbf16>
    %60 = arith.extf %59 : vector<48x256xbf16> to vector<48x256xf32>
    %61 = arith.negf %60 : vector<48x256xf32>
    %62 = math.exp %61 : vector<48x256xf32>
    %cst_53 = arith.constant 1.000000e+00 : f32
    %63 = vector.broadcast %cst_53 : f32 to vector<48x256xf32>
    %64 = arith.addf %63, %62 : vector<48x256xf32>
    %65 = arith.divf %63, %64 : vector<48x256xf32>
    %cst_54 = arith.constant 1.000000e+00 : f32
    %66 = vector.broadcast %cst_54 : f32 to vector<48x256xf32>
    %67 = arith.addf %66, %65 : vector<48x256xf32>
    %68 = arith.mulf %57, %67 : vector<48x256xf32>
    %69 = arith.truncf %68 : vector<48x256xf32> to vector<48x256xbf16>
    %c0_55 = arith.constant 0 : index
    %c0_56 = arith.constant 0 : index
    %c0_57 = arith.constant 0 : index
    %70 = vector.load %arg5[%c0_55, %c0_56, %c0_57] : memref<1x48x256xbf16, #tpu.memory_space<vmem>>, vector<1x48x256xbf16>
    %71 = vector.shape_cast %70 : vector<1x48x256xbf16> to vector<48x256xbf16>
    %72 = vector.shape_cast %69 : vector<48x256xbf16> to vector<1x48x256xbf16>
    tpu.vector_store %arg5[%c0_55, %c0_56, %c0_57], %72 {strides = array<i32>} : memref<1x48x256xbf16, #tpu.memory_space<vmem>>, vector<1x48x256xbf16>,
    return
  }
  func.func @transform_0(%arg0: i32) -> (i32, i32, i32) {
    %c0_i32 = arith.constant 0 : i32
    %c0_i32_0 = arith.constant 0 : i32
    %c0_i32_1 = arith.constant 0 : i32
    return %arg0, %c0_i32, %c0_i32_0 : i32, i32, i32
  }
  func.func @transform_1(%arg0: i32) -> (i32, i32, i32) {
    %c0_i32 = arith.constant 0 : i32
    %c0_i32_0 = arith.constant 0 : i32
    %c0_i32_1 = arith.constant 0 : i32
    %c0_i32_2 = arith.constant 0 : i32
    return %c0_i32, %c0_i32_0, %c0_i32_1 : i32, i32, i32
  }
  func.func @transform_2(%arg0: i32) -> (i32, i32) {
    %c0_i32 = arith.constant 0 : i32
    %c0_i32_0 = arith.constant 0 : i32
    %c0_i32_1 = arith.constant 0 : i32
    return %c0_i32, %c0_i32_0 : i32, i32
  }
  func.func @transform_3(%arg0: i32) -> (i32, i32, i32) {
    %c0_i32 = arith.constant 0 : i32
    %c0_i32_0 = arith.constant 0 : i32
    %c0_i32_1 = arith.constant 0 : i32
    return %arg0, %c0_i32, %c0_i32_0 : i32, i32, i32
  }
  func.func @transform_4(%arg0: i32) -> (i32, i32, i32) {
    %c0_i32 = arith.constant 0 : i32
    %c0_i32_0 = arith.constant 0 : i32
    %c0_i32_1 = arith.constant 0 : i32
    return %arg0, %c0_i32, %c0_i32_0 : i32, i32, i32
  }
}

module attributes {stable_mosaic.version = 11 : i64} {
  func.func @_conv_taps_bn_kernel(%arg0: i32, %arg1: memref<1x128x36xbf16, #tpu.memory_space<vmem>>, %arg2: memref<1x36x128xbf16, #tpu.memory_space<vmem>>, %arg3: memref<1x128xf32, #tpu.memory_space<vmem>>, %arg4: memref<1x128x128xbf16, #tpu.memory_space<vmem>>) attributes {dimension_semantics = [#tpu.dimension_semantics<parallel>], iteration_bounds = array<i64: 1>, scalar_prefetch = 0 : i64, scratch_operands = 0 : i64, tpu.core_type = #tpu.core_type<tc>, window_params = [{transform_indices = @transform_0, window_bounds = array<i64: 1, 128, 36>}, {pipeline_mode = #tpu.pipeline_mode<synchronous>, transform_indices = @transform_1, window_bounds = array<i64: 1, 36, 128>}, {pipeline_mode = #tpu.pipeline_mode<synchronous>, transform_indices = @transform_2, window_bounds = array<i64: 1, 128>}, {transform_indices = @transform_3, window_bounds = array<i64: 1, 128, 128>}]} {
    %c0 = arith.constant 0 : index
    %c0_0 = arith.constant 0 : index
    %c0_1 = arith.constant 0 : index
    %0 = vector.load %arg1[%c0, %c0_0, %c0_1] : memref<1x128x36xbf16, #tpu.memory_space<vmem>>, vector<1x128x36xbf16>
    %1 = vector.shape_cast %0 : vector<1x128x36xbf16> to vector<128x36xbf16>
    %c0_2 = arith.constant 0 : index
    %c0_3 = arith.constant 0 : index
    %c0_4 = arith.constant 0 : index
    %2 = vector.load %arg2[%c0_2, %c0_3, %c0_4] : memref<1x36x128xbf16, #tpu.memory_space<vmem>>, vector<1x36x128xbf16>
    %3 = vector.shape_cast %2 : vector<1x36x128xbf16> to vector<36x128xbf16>
    %cst = arith.constant dense<0.000000e+00> : vector<128x128xf32>
    %4 = tpu.matmul %1, %3, %cst {dimension_numbers = #tpu.dot_dimension_numbers<[1], [0], [0], [1], [0, 0, 1, 1], [], []>} : vector<128x36xbf16>, vector<36x128xbf16>, vector<128x128xf32> -> vector<128x128xf32>
    %c0_5 = arith.constant 0 : index
    %c0_6 = arith.constant 0 : index
    %5 = vector.load %arg3[%c0_5, %c0_6] : memref<1x128xf32, #tpu.memory_space<vmem>>, vector<1x128xf32>
    %6 = vector.broadcast %5 : vector<1x128xf32> to vector<128x128xf32>
    %7 = arith.addf %4, %6 : vector<128x128xf32>
    %cst_7 = arith.constant 0.000000e+00 : f32
    %8 = vector.broadcast %cst_7 : f32 to vector<128x128xf32>
    %9 = arith.maximumf %7, %8 : vector<128x128xf32>
    %10 = arith.truncf %9 : vector<128x128xf32> to vector<128x128xbf16>
    %c0_8 = arith.constant 0 : index
    %c0_9 = arith.constant 0 : index
    %c0_10 = arith.constant 0 : index
    %11 = vector.load %arg4[%c0_8, %c0_9, %c0_10] : memref<1x128x128xbf16, #tpu.memory_space<vmem>>, vector<1x128x128xbf16>
    %12 = vector.shape_cast %11 : vector<1x128x128xbf16> to vector<128x128xbf16>
    %13 = vector.shape_cast %10 : vector<128x128xbf16> to vector<1x128x128xbf16>
    tpu.vector_store %arg4[%c0_8, %c0_9, %c0_10], %13 {strides = array<i32>} : memref<1x128x128xbf16, #tpu.memory_space<vmem>>, vector<1x128x128xbf16>,
    return
  }
  func.func @transform_0(%arg0: i32) -> (i32, i32, i32) {
    %c0_i32 = arith.constant 0 : i32
    %c0_i32_0 = arith.constant 0 : i32
    %c0_i32_1 = arith.constant 0 : i32
    return %arg0, %c0_i32, %c0_i32_0 : i32, i32, i32
  }
  func.func @transform_1(%arg0: i32) -> (i32, i32, i32) {
    %c0_i32 = arith.constant 0 : i32
    %c0_i32_0 = arith.constant 0 : i32
    %c0_i32_1 = arith.constant 0 : i32
    %c0_i32_2 = arith.constant 0 : i32
    return %c0_i32, %c0_i32_0, %c0_i32_1 : i32, i32, i32
  }
  func.func @transform_2(%arg0: i32) -> (i32, i32) {
    %c0_i32 = arith.constant 0 : i32
    %c0_i32_0 = arith.constant 0 : i32
    %c0_i32_1 = arith.constant 0 : i32
    return %c0_i32, %c0_i32_0 : i32, i32
  }
  func.func @transform_3(%arg0: i32) -> (i32, i32, i32) {
    %c0_i32 = arith.constant 0 : i32
    %c0_i32_0 = arith.constant 0 : i32
    %c0_i32_1 = arith.constant 0 : i32
    return %arg0, %c0_i32, %c0_i32_0 : i32, i32, i32
  }
}

</mosaic_0001>

<bundles_post_ra>
// kernel: tpu_custom_call.1
= control target key start
LH: loop header
LB: loop body
LE: loop exit
PB: predicated region body
PF: predicated region fallthrough
CT: control target
= control target key end

     0   :  { %9 = vsyncpa [#allocation3], 0  ;;  %s2475_s0 = inlined_call_operand.vmem [shape: bf16[4,96,8], index: 0, kind: input, shape index: {}]   ;;  %s2476_s1 = inlined_call_operand.hbm [shape: bf16[9,8,256], index: 1, kind: input, shape index: {}]   ;;  %s2477_s2 = inlined_call_operand.vmem [shape: f32[1,256], index: 2, kind: input, shape index: {}]   ;;  %s2478_s3 = inlined_call_operand.vmem [shape: bf16[4,48,256], index: 3, kind: input, shape index: {}]   ;;  %s2479_s4 = inlined_call_operand.hbm [shape: bf16[4,48,256], index: 4, kind: output, shape index: {}]  }
   0x1   :  { %10 = vsyncpa [#allocation4], 0 }
   0x2   :  { %12 = vsyncpa [#allocation4 + $0x1], 0  ;;  %s2088_s15 = smov 0   ;;  %s2090_s16 = smov 0  }
   0x3   :  { %s2092_s17 = smov 0   ;;  %s2094_s18 = smov 0  }
   0x4 LB: > { %s2109_s19 = sadd.s32 4294967295, %s2054_s18   ;;  %s1607_s20 = sadd.s32 4294967294, %s2054_s18   ;;  %s2054_s18 = sphi %s2094_s18, %s2495_s18   ;;  %s2050_s17 = sphi %s2092_s17, %s2494_s17   ;;  %s2046_s16 = sphi %s2090_s16, %s2493_s16   ;;  %s2042_s15 = sphi %s2088_s15, %s2492_s15  }
   0x5   : > { %s2113_s21 = sadd.s32 1, %s2054_s18   ;;  %s119_s22 = sadd.s32 1, %s2050_s17 }
   0x6   : > { %s116_s23 = ssub.s32 %s2054_s18, %s2113_s21  ;;  %p129_p0 = scmp.ne.s32.totalorder %s2050_s17, %s2046_s16 }
   0x7   : > { %p117_p1 = scmp.eq.s32.totalorder %s116_s23, 0  ;;  %p130_p2 = scmp.eq.s32.totalorder %s2109_s19, 3 }
   0x8   : > { %p135_p3 = scmp.ne.s32.totalorder %s2046_s16, %s2042_s15  ;;  %p136_p4 = scmp.eq.s32.totalorder %s1607_s20, 3 }
   0x9   : > { %s2124_s24 = scalar_select %p117_p1, %s2050_s17, %s119_s22  }
   0xa   : > { %p2126_p5 = por %p130_p2, %p129_p0  ;;  %p2130_p6 = por %p136_p4, %p135_p3 }
   0xb   : > { %p1608_p7 = scmp.ge.s32.totalorder %s2054_s18, 1  ;;  %p143_p8 = scmp.lt.s32.totalorder %s2054_s18, 5 }
   0xc   : > { %s2483_s25 = scalar_select %p2126_p5, 1, 0 }
   0xd   : > { %s2484_s26 = scalar_select %p2130_p6, 1, 0 }
   0xe   : > { %p2480_p9 = scmp.eq.s32.totalorder %s2109_s19, 0  ;;  %p2137_p10 = pnand %p1608_p7, %p143_p8 }
   0xf   : > { %s2056_s28 = smov [#allocation2]   ;;  %s1960_s7 = scalar_lea.hbm %s2476_s1, 1152 }
  0x10   : > { %s2485_s27 = scalar_select %p2137_p10, 1, 0 }
  0x11   : > { %s155_s29 = sshll.u32 %s2056_s28, 4  ;;  %p1824_p11 = pneg %p2137_p10  ;;  %s156_s29 = int_to_ptr.vmem [resolvable:$true] %s155_s29 }
  0x12   : > { %p1961_p13 = scmp.ne.s32.totalorder %s2476_s1, %s1960_s7  ;;  %p1967_p3 = scmp.lt.u32.totalorder %s1960_s7, %s2476_s1 }
  0x13   : > { %p2145_p12 = pnand %p2480_p9, %p1824_p11 }
  0x15   : > { %p1962_p0 = pneg %p2145_p12 }
  0x17   : > { %p1963_p1 = pnand %p1962_p0, %p1961_p13 }
  0x19   : > { %p1964_p2 = pneg %p1963_p1 }
  0x1b   : > { %p1969_p4 = pnand %p1967_p3, %p1964_p2 }
  0x1d   : > { %1972 = shalt.err (!%p1969_p4)
}
  0x1e   : > { %s1973_s12 = scalar_lea.vmem %s156_s29, 1152  ;;  %p1981_p9 = scmp.lt.s32.totalorder %s156_s29, %s156_s29 }
  0x1f   : > { %p1974_p7 = scmp.ne.s32.totalorder %s156_s29, %s1973_s12  ;;  %p1982_p6 = scmp.lt.s32.totalorder %s1973_s12, %s1973_s12 }
  0x21   : > { %p1976_p8 = pnand %p1974_p7, %p1962_p0  ;;  %p1983_p5 = por %p1982_p6, %p1981_p9 }
  0x23   : > { %p1977_p11 = pneg %p1976_p8 }
  0x25   : > { %p1984_p10 = pnand %p1983_p5, %p1977_p11 }
  0x27   : > { %1987 = shalt.err (!%p1984_p10)
}
  0x28   : > { %s2057_s13 = smov 128   ;;  %s2058_s14 = smov 8  }
  0x29   : > { %1827 = dma.hbm_to_vmem [thread:$0]  (!%p2145_p12), %s2476_s1, 1152, %s156_s29, [#allocation3], %s2057_s13, %s2057_s13, %s2058_s14  }
  0x2a   : > { %p2487_p13 = scmp.ne.s32.totalorder %s2485_s27, 0 }
  0x2b   : > { %p2488_p1 = scmp.eq.s32.totalorder (!%p2487_p13), %s2109_s19, 0 }
  0x2c   : > { %190 = sbr.rel (%p2487_p13) target bundleno = 413 (0x19d), region = 36 }
  0x33   : > { %2033 = dma.done.wait (%p2488_p1), [#allocation3], 1152   ;;  %p2489_p0 = pmov %p2488_p1 }
  0x34   : > { %p221_p5 = scmp.lt.s32.totalorder %s2109_s19, 3  ;;  %v2059_v0 = vmov 0   ;;  %v241_v1 = vld [vmem:[#allocation2 + $0x8] sm:$0xff]  ;;  %vm304_vm0 = vcmask 1043456   ;;  %v689_v2 = vld [vmem:[#allocation2 + $0x20] sm:$0xff]  ;;  %vm294_vm1 = vcmask 64512  }
  0x35   : > { %2035 = vsyncadd (%p2489_p0), [#allocation3], 4294966144  ;;  %343 = vmatprep.mubr.bf16.mxu1 %v2059_v0  ;;  %788 = vmatprep.mubr.bf16.mxu0 %v2059_v0  ;;  %v238_v3 = vld [vmem:[#allocation2] sm:$0xff]  ;;  %v1620_v4 = vcombine.high %v241_v1, %v241_v1  ;;  %v1619_v5 = vcombine.low %v241_v1, %v241_v1  ;;  %v2185_v6 = vcombine.high %v689_v2, %v689_v2  ;;  %vm260_vm2 = vsmask.f32 7424  ;;  %v833_v23 = vld [vmem:[#allocation2 + $0x28] sm:$0xff] }
  0x36   : > { %s2175_s23 = scalar_select %p221_p5, %s2109_s19, 3  ;;  %v1651_v7 = vcombine.low %v689_v2, %v689_v2  ;;  %v1626_v10 = vcombine.high %v238_v3, %v238_v3  ;;  %v1625_v20 = vcombine.low %v238_v3, %v238_v3  ;;  %v1659_v26 = vcombine.high %v833_v23, %v833_v23  ;;  %v946_v39 = vld [vmem:[#allocation2 + $0x30] sm:$0xff]  ;;  %v2253_v2 = vld [vmem:[#allocation2 + $0x38] sm:$0xff] }
  0x37   : > { %1621 = vmatprep.subr.msk.bf16.mxu1 %vm304_vm0, %v1620_v4  ;;  %v306_v14 = vsel %vm304_vm0, %v1619_v5, 0  ;;  %1653 = vmatprep.subr.msk.bf16.mxu0 %vm304_vm0, %v2185_v6  ;;  %v1658_v27 = vcombine.low %v833_v23, %v833_v23  ;;  %v2225_v42 = vld [vmem:[#allocation2 + $0x10] sm:$0xff]  ;;  %v1668_v48 = vcombine.high %v946_v39, %v946_v39  ;;  %vm460_vm3 = vcmask 1046528   ;;  %s218_s10 = sand.u32 1, %s2046_s16   ;;  %s1817_s13 = smul.u32 768, %s2109_s19 }
  0x38   : > { %s1816_s27 = smul.u32 48, %s2175_s23  ;;  %v2203_v15 = vsel %vm304_vm0, %v1651_v7, 0  ;;  %312 = vmatpush1.bf16.msra.mxu1 %v306_v14  ;;  %v386_v36 = vsel %vm304_vm0, %v1625_v20, 0  ;;  %v1633_v51 = vcombine.high %v2225_v42, %v2225_v42  ;;  %v1667_v60 = vcombine.low %v946_v39, %v946_v39  ;;  %p2490_p9 = scmp.ne.s32.totalorder %s2483_s25, 0 }
  0x39   : > { %757 = vmatpush1.bf16.msra.mxu0 %v2203_v15  ;;  %1627 = vmatprep.subr.msk.bf16.mxu1 %vm304_vm0, %v1626_v10  ;;  %v859_v45 = vsel %vm304_vm0, %v1658_v27, 0  ;;  %v1678_v20 = vcombine.high %v2253_v2, %v2253_v2  ;;  %s2402_s11 = smul.u32 48, %s218_s10  ;;  %s2429_s23 = scalar_lea.hbm %s2479_s4, %s1817_s13 }
  0x3a   : > { %s2183_s30 = scalar_lea.vmem %s2475_s0, %s1816_s27  ;;  %1660 = vmatprep.subr.msk.bf16.mxu0 %vm304_vm0, %v1659_v26  ;;  %s230_s7 = scalar_lea.vmem %s2478_s3, %s1816_s27 }
  0x3b   : > { %v232_v8 = vld [vmem:[%s2183_s30] sm:$0xf]  ;;  %v2189_v9 = vld [vmem:[%s2183_s30 + $0x4] sm:$0xf]  ;;  %v2195_v12 = vld [vmem:[%s2183_s30 + $0x8] sm:$0xff]   ;;  %s2407_s12 = scalar_lea.vmem [#allocation5], %s2402_s11 }
  0x3c   : > { %v2192_v11 = vcombine.low %v232_v8, %v2189_v9  ;;  %v681_v13 = vld [vmem:[%s2183_s30 + $0x8] sm:$0xf]  ;;  %v682_v16 = vld [vmem:[%s2183_s30 + $0xc] sm:$0xf]  ;;  %v269_v19 = vshll.u32 %v2195_v12, 16  ;;  %v2212_v22 = vld [vmem:[%s2183_s30 + $0x10] sm:$0xff]  }
  0x3d   : > { %v1647_v21 = vcombine.low %v681_v13, %v682_v16  ;;  %v2215_v28 = vld [vmem:[%s2183_s30 + $0x10] sm:$0xff]   ;;  %v716_v31 = vshll.u32 %v2212_v22, 16  ;;  %v720_v32 = vshrl.u32 %v2212_v22, 16  ;;  %v273_v34 = vshrl.u32 %v2195_v12, 16  ;;  %v831_v41 = vld [vmem:[%s2183_s30 + $0x8] sm:$0xe] }
  0x3e   : > { %v262_v17 = vshrl.u32 %v2192_v11, 16  ;;  %v264_v18 = vshll.u32 %v2192_v11, 16  ;;  %v271_v25 = vrot.slane %v269_v19, 1  ;;  %v277_v35 = vshll.u32 %v2215_v28, 16  ;;  %v2246_v56 = vld [vmem:[%s2183_s30 + $0x18] sm:$0xff]   ;;  %v1906_v61 = vld [vmem:[%s2183_s30 + $0x20] sm:$0xff]  }
  0x3f   : > { %v709_v29 = vshrl.u32 %v1647_v21, 16  ;;  %v711_v30 = vshll.u32 %v1647_v21, 16  ;;  %v718_v38 = vrot.slane %v716_v31, 1  ;;  %v2233_v49 = vld [vmem:[%s2183_s30 + $0x18] ss:$0 sps:$4 sm:$0x11]   ;;  %v1657_v52 = vcombine.low %v831_v41, %v682_v16 }
  0x40   : > { %v266_v24 = vrot.slane %v264_v18, 1  ;;  %v275_v46 = vor.u32 %v273_v34, %v271_v25  ;;  %v279_v47 = vrot.slane %v277_v35, 1  ;;  %v281_v54 = vshrl.u32 %v2215_v28, 16  ;;  %v1903_v57 = vld [vmem:[%s2183_s30 + $0x18] sm:$0xff]   ;;  %v2257_v7 = vld [vmem:[%s2183_s30 + $0x14] sm:$0xf] }
  0x41   : > { %v713_v37 = vrot.slane %v711_v30, 1  ;;  %v2228_v44 = vor.u32 %v720_v32, %v718_v38  ;;  %v285_v55 = vshll.u32 %v2233_v49, 16  ;;  %v837_v58 = vrot.slane %v1657_v52, 1  ;;  %v1908_v10 = vld [vmem:[%s2183_s30 + $0x28] ss:$0 sps:$4 sm:$0x11]  }
  0x42   : > { %v267_v33 = vor.u32 %v266_v24, %v262_v17  ;;  %v280_v53 = vsel %vm260_vm2, %v275_v46, %v279_v47  ;;  %v838_v59 = vrot.slane %v2212_v22, 1  ;;  %v283_v62 = vor.u32 %v281_v54, %v279_v47  ;;  %v1893_v17 = vld [vmem:[%s2183_s30 + $0x20] ss:$0 sps:$4 sm:$0x11]   ;;  %v1207_v23 = vld [vmem:[%s2183_s30 + $0x10] sm:$0xe] }
  0x43   : > { %v714_v43 = vor.u32 %v713_v37, %v709_v29  ;;  %v287_v63 = vrot.slane %v285_v55, 1  ;;  %v1092_v1 = vshll.u32 %v1903_v57, 16  ;;  %v1096_v3 = vshrl.u32 %v1903_v57, 16  ;;  %v1894_v54 = vld [vmem:[%s2183_s30 + $0x10] sm:$0xff]   ;;  %v1209_v55 = vld [vmem:[#allocation2 + $0x40] sm:$0xff]  ;;  %s1521_s14 = sshll.u32 %s2407_s12, 4  ;;  %s2423_s14 = int_to_ptr.vmem [resolvable:$true] %s1521_s14 }
  0x44   : > { %v272_v40 = vsel %vm260_vm2, %v267_v33, %v271_v25  ;;  %v1100_v4 = vshll.u32 %v1906_v61, 16  ;;  %v840_v5 = vrot.slane %v2246_v56, 1  ;;  %v1104_v13 = vshrl.u32 %v1906_v61, 16  ;;  %s2434_s27 = scalar_lea.sflag [#allocation4], %s218_s10  ;;  %s1988_s19 = scalar_lea.vmem %s2423_s14, 768 }
  0x45   : > { %1622 = vmatmul.mubr.msk.bf16.vlgmr.msra.gmra.mrb[0].mxu1 %vm294_vm1, %v272_v40  ;;  %v719_v50 = vsel %vm260_vm2, %v714_v43, %v718_v38  ;;  %v2259_v8 = vrot.slane %v1092_v1, 1  ;;  %v839_v14 = vsel %vm460_vm3, %v837_v58, %v838_v59  ;;  %v977_v16 = vsel %vm304_vm0, %v1667_v60, 0  ;;  %p1989_p6 = scmp.ne.s32.totalorder %s2423_s14, %s1988_s19  ;;  %s2060_s28 = smov [#allocation5]  }
  0x46   : > { %392 = vmatpush1.bf16.msra.mxu1 %v386_v36  ;;  %353 = vmatprep.mubr.bf16.mxu1 %v2059_v0  ;;  %v1102_v18 = vrot.slane %v1100_v4, 1  ;;  %v288_v19 = vsel %vm260_vm2, %v283_v62, %v287_v63  ;;  %v1108_v22 = vshll.u32 %v1908_v10, 16  ;;  %v1683_v25 = vcombine.low %v1207_v23, %v2257_v7  ;;  %v1901_v4 = vld [vmem:[%s2183_s30 + $0x20] sm:$0xff]   ;;  %s1992_s29 = sshll.u32 %s2060_s28, 4  ;;  %s1993_s29 = int_to_ptr.vmem [resolvable:$false] %s1992_s29 }
  0x47   : > { %1654 = vmatmul.mubr.msk.bf16.vlgmr.msra.gmra.mrb[0].mxu0 %vm294_vm1, %v719_v50  ;;  %1634 = vmatprep.subr.msk.bf16.mxu1 %vm304_vm0, %v1633_v51  ;;  %v1098_v21 = vor.u32 %v1096_v3, %v2259_v8  ;;  %v1214_v26 = vrot.slane %v1903_v57, 1  ;;  %v1216_v27 = vrot.slane %v1906_v61, 1  ;;  %v724_v31 = vshll.u32 %v2246_v56, 16  ;;  %v1057_v61 = vld [vmem:[%s2183_s30 + $0x10] sm:$0xf]  ;;  %p1990_p10 = pnand %p1989_p6, %p2490_p9  ;;  %p1995_p2 = scmp.lt.s32.totalorder %s2423_s14, %s1993_s29 }
  0x48   : > { %865 = vmatpush1.bf16.msra.mxu0 %v859_v45  ;;  %896 = vmatprep.mubr.bf16.mxu0 %v2059_v0  ;;  %v1106_v24 = vor.u32 %v1104_v13, %v1102_v18  ;;  %v1110_v30 = vrot.slane %v1108_v22, 1  ;;  %v1218_v32 = vrot.slane %v1908_v10, 1  ;;  %v1213_v33 = vrot.slane %v1683_v25, 1  ;;  %v570_v45 = vld [vmem:[#allocation2 + $0x18] sm:$0xff] }
  0x49   : > { %1669 = vmatprep.subr.msk.bf16.mxu0 %vm304_vm0, %v1668_v48  ;;  %v2273_v29 = vsel %vm260_vm2, %v1098_v21, %v1102_v18  ;;  %v2278_v34 = vsel %vm460_vm3, %v1214_v26, %v1216_v27  ;;  %v728_v35 = vshrl.u32 %v2246_v56, 16  ;;  %v732_v36 = vshll.u32 %v1893_v17, 16  ;;  %v1911_v18 = vld [vmem:[%s2183_s30 + $0x18] sm:$0xff]   ;;  %p1991_p12 = pneg %p1990_p10 }
  0x4a   : > { %v2284_v37 = vsel %vm260_vm2, %v1106_v24, %v1110_v30  ;;  %v726_v38 = vrot.slane %v724_v31, 1  ;;  %v2287_v39 = vsel %vm460_vm3, %v1216_v27, %v1218_v32  ;;  %v1632_v40 = vcombine.low %v2225_v42, %v2225_v42  ;;  %v1353_v27 = vld [vmem:[%s230_s7 + $0x10] sm:$0xff] }
  0x4b   : > { %v2293_v41 = vsel %vm460_vm3, %v1213_v33, %v1214_v26  ;;  %v734_v43 = vrot.slane %v732_v36, 1  ;;  %v841_v48 = vsel %vm460_vm3, %v838_v59, %v840_v5  ;;  %v1642_v51 = vcombine.high %v570_v45, %v570_v45 }
  0x4c   : > { %v2297_v46 = vsel %vm260_vm2, %v2228_v44, %v726_v38  ;;  %v730_v47 = vor.u32 %v728_v35, %v726_v38  ;;  %v483_v42 = vsel %vm304_vm0, %v1632_v40, 0  ;;  %v842_v44 = vrot.slane %v1893_v17, 1 }
  0x4d   : > { %1623 = vmatmul.mubr.msk.bf16.gmra.mrb[4].mxu1 %vm294_vm1, %v280_v53  ;;  %v454_v53 = vld [vmem:[%s2183_s30] sm:$0xe]  ;;  %v1685_v58 = vcombine.high %v1209_v55, %v1209_v55  ;;  %v462_v60 = vrot.slane %v2195_v12, 1  ;;  %v1641_v62 = vcombine.low %v570_v45, %v570_v45  ;;  %v1673_v63 = vcombine.low %v1057_v61, %v2257_v7 }
  0x4e   : > { %363 = vmatprep.mubr.bf16.mxu1 %v2059_v0  ;;  %v2301_v50 = vsel %vm260_vm2, %v730_v47, %v734_v43  ;;  %v843_v52 = vsel %vm460_vm3, %v840_v5, %v842_v44  ;;  %v1631_v57 = vcombine.low %v454_v53, %v2189_v9  ;;  %v1897_v9 = vld [vmem:[%s2183_s30 + $0x18] sm:$0xff]   ;;  %v1361_v30 = vunpack.c.l.bf16 %v1353_v27  ;;  %v1356_v43 = vld [vmem:[%s230_s7 + $0x28] sm:$0xff] }
  0x4f   : > { %v1087_v3 = vshll.u32 %v1673_v63, 16  ;;  %v1085_v5 = vshrl.u32 %v1673_v63, 16  ;;  %v1362_v31 = vunpack.c.h.bf16 %v1353_v27 }
  0x50   : > { %v461_v59 = vrot.slane %v1631_v57, 1 }
  0x51   : > { %v1089_v7 = vrot.slane %v1087_v3, 1  ;;  %v1695_v36 = vmul.f32 -1.442695, %v1362_v31 }
  0x52   : > { %v463_v1 = vsel %vm460_vm3, %v461_v59, %v462_v60 }
  0x53   : > { %1661 = vmatmul.mubr.msk.bf16.vlgmr.msra.gmra.mrb[0].mxu0 %vm294_vm1, %v839_v14  ;;  %v1090_v13 = vor.u32 %v1089_v7, %v1085_v5  ;;  %v1684_v14 = vcombine.low %v1209_v55, %v1209_v55 }
  0x54   : > { %983 = vmatpush1.bf16.msra.mxu0 %v977_v16  ;;  %906 = vmatprep.mubr.bf16.mxu0 %v2059_v0 }
  0x55   : > { %1624 = vmatmul.mubr.msk.bf16.gmra.mrb[8].mxu1 %vm294_vm1, %v288_v19  ;;  %1679 = vmatprep.subr.msk.bf16.mxu0 %vm304_vm0, %v1678_v20  ;;  %v1235_v17 = vsel %vm304_vm0, %v1684_v14, 0  ;;  %v1352_v19 = vld [vmem:[%s230_s7 + $0x8] sm:$0xff] }
  0x56   : > { %423 = vmatprep.mubr.bf16.mxu1 %v2059_v0  ;;  %v1359_v22 = vunpack.c.l.bf16 %v1352_v19  ;;  %v1360_v23 = vunpack.c.h.bf16 %v1352_v19 }
  0x58   : > { %v1693_v26 = vmul.f32 -1.442695, %v1360_v23 }
  0x5b   : > { %1662 = vmatmul.mubr.msk.bf16.gmra.mrb[4].mxu0 %vm294_vm1, %v841_v48 }
  0x5c   : > { %916 = vmatprep.mubr.bf16.mxu0 %v2059_v0 }
  0x5d   : > { %1628 = vmatmul.mubr.msk.bf16.vlgmr.msra.gmra.mrb[0].mxu1 %vm294_vm1, %v2192_v11  ;;  %v1677_v11 = vcombine.low %v2253_v2, %v2253_v2  ;;  %v601_v2 = vsel %vm304_vm0, %v1641_v62, 0 }
  0x5e   : > { %489 = vmatpush1.bf16.msra.mxu1 %v483_v42  ;;  %433 = vmatprep.mubr.bf16.mxu1 %v2059_v0 }
  0x5f   : > { %1643 = vmatprep.subr.msk.bf16.mxu1 %vm304_vm0, %v1642_v51  ;;  %v1127_v56 = vsel %vm304_vm0, %v1677_v11, 0  ;;  %v1367_v51 = vunpack.c.l.bf16 %v1356_v43  ;;  %v1368_v11 = vunpack.c.h.bf16 %v1356_v43 }
  0x61   : > { %v1700_v59 = vmul.f32 -1.442695, %v1367_v51 }
  0x63   : > { %1663 = vmatmul.mubr.msk.bf16.gmra.mrb[8].mxu0 %vm294_vm1, %v843_v52 }
  0x64   : > { %1014 = vmatprep.mubr.bf16.mxu0 %v2059_v0 }
  0x65   : > { %1629 = vmatmul.mubr.msk.bf16.gmra.mrb[4].mxu1 %vm294_vm1, %v2195_v12  ;;  %v464_v12 = vrot.slane %v2215_v28, 1 }
  0x66   : > { %443 = vmatprep.mubr.bf16.mxu1 %v2059_v0 }
  0x67   : > { %v465_v10 = vsel %vm460_vm3, %v462_v60, %v464_v12  ;;  %v1701_v60 = vmul.f32 -1.442695, %v1368_v11 }
  0x6b   : > { %1670 = vmatmul.mubr.msk.bf16.vlgmr.msra.gmra.mrb[0].mxu0 %vm294_vm1, %v1894_v54 }
  0x6c   : > { %1133 = vmatpush1.bf16.msra.mxu0 %v1127_v56  ;;  %1024 = vmatprep.mubr.bf16.mxu0 %v2059_v0  ;;  %v1317_v56 = vlaneseq }
  0x6d   : > { %1630 = vmatmul.mubr.msk.bf16.gmra.mrb[8].mxu1 %vm294_vm1, %v2215_v28  ;;  %1686 = vmatprep.subr.msk.bf16.mxu0 %vm304_vm0, %v1685_v58  ;;  %v466_v28 = vrot.slane %v2233_v49, 1  ;;  %v1907_v49 = vld [vmem:[%s2183_s30 + $0x8] sm:$0xff]  }
  0x6e   : > { %520 = vmatprep.mubr.bf16.mxu1 %v2059_v0  ;;  %v1318_v61 = vshrl.u32 %v1317_v56, 7 }
  0x6f   : > { %v467_v16 = vsel %vm460_vm3, %v464_v12, %v466_v28 }
  0x70   : > { %v1323_v5 = vsub.s32 1, %v1318_v61 }
  0x73   : > { %1671 = vmatmul.mubr.msk.bf16.gmra.mrb[4].mxu0 %vm294_vm1, %v1897_v9 }
  0x74   : > { %1034 = vmatprep.mubr.bf16.mxu0 %v2059_v0 }
  0x75   : > { %1635 = vmatmul.mubr.msk.bf16.vlgmr.msra.gmra.mrb[0].mxu1 %vm294_vm1, %v463_v1 }
  0x76   : > { %607 = vmatpush1.bf16.msra.mxu1 %v601_v2  ;;  %530 = vmatprep.mubr.bf16.mxu1 %v2059_v0  ;;  %v1319_v2 = vsub.s32 0, %v1318_v61 }
  0x77   : > { %1717 = vmatprep.subr.msk.bf16.mxu1 %vm304_vm0, %v2185_v6  ;;  %v1095_v6 = vsel %vm260_vm2, %v1090_v13, %v2259_v8  ;;  %v1909_v8 = vld [vmem:[%s2183_s30 + $0x10] sm:$0xff]   ;;  %s1994_s30 = scalar_lea.vmem %s1993_s29, 1536 }
  0x78   : > { %p1996_p3 = scmp.lt.s32.totalorder %s1994_s30, %s1988_s19 }
  0x7a   : > { %p1997_p4 = por %p1996_p3, %p1995_p2 }
  0x7b   : > { %1672 = vmatmul.mubr.msk.bf16.gmra.mrb[8].mxu0 %vm294_vm1, %v1901_v4  ;;  %v1315_v4 = vld [vmem:[%s2477_s2] sm:$0x3] }
  0x7c   : > { %1164 = vmatprep.mubr.bf16.mxu0 %v2059_v0  ;;  %p1998_p7 = pnand %p1997_p4, %p1991_p12 }
  0x7d   : > { %1636 = vmatmul.mubr.msk.bf16.gmra.mrb[4].mxu1 %vm294_vm1, %v465_v10 }
  0x7e   : > { %540 = vmatprep.mubr.bf16.mxu1 %v2059_v0 }
  0x83   : > { %1680 = vmatmul.mubr.msk.bf16.vlgmr.msra.gmra.mrb[0].mxu0 %vm294_vm1, %v1095_v6 }
  0x84   : > { %1241 = vmatpush1.bf16.msra.mxu0 %v1235_v17  ;;  %1174 = vmatprep.mubr.bf16.mxu0 %v2059_v0 }
  0x85   : > { %1637 = vmatmul.mubr.msk.bf16.gmra.mrb[8].mxu1 %vm294_vm1, %v467_v16  ;;  %v2393_v16 = vrot.slane %v1315_v4, %v1319_v2 }
  0x86   : > { %638 = vmatprep.mubr.bf16.mxu1 %v2059_v0 }
  0x8b   : > { %1681 = vmatmul.mubr.msk.bf16.gmra.mrb[4].mxu0 %vm294_vm1, %v2273_v29  ;;  %v1354_v29 = vld [vmem:[%s230_s7 + $0x18] sm:$0xff] }
  0x8c   : > { %1184 = vmatprep.mubr.bf16.mxu0 %v2059_v0  ;;  %v1363_v32 = vunpack.c.l.bf16 %v1354_v29  ;;  %v1364_v33 = vunpack.c.h.bf16 %v1354_v29 }
  0x8d   : > { %1644 = vmatmul.mubr.msk.bf16.vlgmr.msra.gmra.mrb[0].mxu1 %vm294_vm1, %v1907_v49 }
  0x8e   : > { %1718 = vmatpush1.bf16.msra.mxu1 %v2203_v15  ;;  %648 = vmatprep.mubr.bf16.mxu1 %v2059_v0  ;;  %v1351_v15 = vld [vmem:[%s230_s7] sm:$0xff] }
  0x8f   : > { %v1357_v20 = vunpack.c.l.bf16 %v1351_v15  ;;  %v1358_v21 = vunpack.c.h.bf16 %v1351_v15 }
  0x91   : > { %v1690_v24 = vmul.f32 -1.442695, %v1357_v20  ;;  %v1691_v25 = vmul.f32 -1.442695, %v1358_v21 }
  0x93   : > { %1682 = vmatmul.mubr.msk.bf16.gmra.mrb[8].mxu0 %vm294_vm1, %v2284_v37  ;;  %1912 = vpow2.f32 %v1690_v24  ;;  %v1355_v37 = vld [vmem:[%s230_s7 + $0x20] sm:$0xff] }
  0x94   : > { %1272 = vmatprep.mubr.bf16.mxu0 %v2059_v0  ;;  %1914 = vpow2.f32 %v1691_v25  ;;  %v1365_v47 = vunpack.c.l.bf16 %v1355_v37 }
  0x95   : > { %1645 = vmatmul.mubr.msk.bf16.gmra.mrb[4].mxu1 %vm294_vm1, %v1909_v8  ;;  %v2395_v8 = vrot.slane %v1315_v4, %v1323_v5 }
  0x96   : > { %658 = vmatprep.mubr.bf16.mxu1 %v2059_v0  ;;  %v1698_v54 = vmul.f32 -1.442695, %v1365_v47 }
  0x9b   : > { %1687 = vmatmul.mubr.msk.bf16.vlgmr.msra.gmra.mrb[0].mxu0 %vm294_vm1, %v2293_v41  ;;  %v1697_v41 = vmul.f32 -1.442695, %v1364_v33 }
  0x9c   : > { %1282 = vmatprep.mubr.bf16.mxu0 %v2059_v0 }
  0x9d   : > { %1646 = vmatmul.mubr.msk.bf16.gmra.mrb[8].mxu1 %vm294_vm1, %v1911_v18  ;;  %v1913_v35 = vpop.eup %1912 }
  0x9e   : > { %798 = vmatprep.mubr.bf16.mxu1 %v2059_v0  ;;  %v1915_v38 = vpop.eup %1914 }
  0x9f   : > { %v1406_v48 = vadd.f32 1.0, %v1915_v38 }
  0xa3   : > { %1688 = vmatmul.mubr.msk.bf16.gmra.mrb[4].mxu0 %vm294_vm1, %v2278_v34  ;;  %v1694_v34 = vmul.f32 -1.442695, %v1361_v30 }
  0xa4   : > { %1292 = vmatprep.mubr.bf16.mxu0 %v2059_v0 }
  0xa5   : > { %1655 = vmatmul.mubr.msk.bf16.vlgmr.msra.gmra.mrb[4].mxu1 %vm294_vm1, %v2297_v46  ;;  %v1405_v46 = vadd.f32 1.0, %v1913_v35 }
  0xa6   : > { %808 = vmatprep.mubr.bf16.mxu1 %v2059_v0  ;;  %v1692_v0 = vmul.f32 -1.442695, %v1359_v22 }
  0xa8   : > { %1916 = vpow2.f32 %v1692_v0 }
  0xa9   : > { %1918 = vpow2.f32 %v1693_v26 }
  0xaa   : > { %1920 = vpow2.f32 %v1694_v34 }
  0xab   : > { %1689 = vmatmul.mubr.msk.bf16.gmra.mrb[8].mxu0 %vm294_vm1, %v2287_v39  ;;  %v1696_v39 = vmul.f32 -1.442695, %v1363_v32  ;;  %1922 = vpow2.f32 %v1695_v36 }
  0xad   : > { %1656 = vmatmul.mubr.msk.bf16.gmra.mrb[8].mxu1 %vm294_vm1, %v2301_v50  ;;  %v1366_v50 = vunpack.c.h.bf16 %v1355_v37  ;;  %1924 = vpow2.f32 %v1696_v39 }
  0xae   : > { %1926 = vpow2.f32 %v1697_v41 }
  0xaf   : > { %1928 = vrcp.f32 %v1405_v46  ;;  %v1699_v57 = vmul.f32 -1.442695, %v1366_v50 }
  0xb0   : > { %1930 = vrcp.f32 %v1406_v48 }
  0xb2   : > { %v1917_v40 = vpop.eup %1916 }
  0xb3   : > { %v1919_v45 = vpop.eup %1918  ;;  %v1407_v42 = vadd.f32 1.0, %v1917_v40 }
  0xb4   : > { %v1408_v52 = vadd.f32 1.0, %v1919_v45  ;;  %v1921_v62 = vpop.eup %1920 }
  0xb5   : > { %1932 = vrcp.f32 %v1407_v42  ;;  %v1923_v9 = vpop.eup %1922  ;;  %v1409_v3 = vadd.f32 1.0, %v1921_v62 }
  0xb6   : > { %1934 = vrcp.f32 %v1408_v52  ;;  %v1410_v7 = vadd.f32 1.0, %v1923_v9 }
  0xb7   : > { %1936 = vpow2.f32 %v1698_v54  ;;  %v1925_v63 = vpop.eup %1924 }
  0xb8   : > { %1938 = vpow2.f32 %v1699_v57  ;;  %v1927_v1 = vpop.eup %1926  ;;  %v1411_v13 = vadd.f32 1.0, %v1925_v63 }
  0xb9   : > { %1940 = vpow2.f32 %v1700_v59  ;;  %v1929_v12 = vpop.eup %1928  ;;  %v1412_v14 = vadd.f32 1.0, %v1927_v1 }
  0xba   : > { %1942 = vpow2.f32 %v1701_v60  ;;  %v1931_v10 = vpop.eup %1930  ;;  %v1441_v25 = vadd.f32 1.0, %v1929_v12 }
  0xbb   : > { %1944 = vrcp.f32 %v1409_v3  ;;  %v1442_v30 = vadd.f32 1.0, %v1931_v10 }
  0xbc   : > { %1946 = vrcp.f32 %v1410_v7 }
  0xbd   : > { %1948 = vrcp.f32 %v1411_v13 }
  0xbe   : > { %1950 = vrcp.f32 %v1412_v14 }
  0xbf   : > { %v1933_v28 = vpop.eup %1932 }
  0xc0   : > { %v1935_v6 = vpop.eup %1934  ;;  %v1443_v35 = vadd.f32 1.0, %v1933_v28 }
  0xc1   : > { %v1937_v17 = vpop.eup %1936  ;;  %v1444_v39 = vadd.f32 1.0, %v1935_v6 }
  0xc2   : > { %v1939_v18 = vpop.eup %1938  ;;  %v1413_v27 = vadd.f32 1.0, %v1937_v17 }
  0xc3   : > { %v1941_v20 = vpop.eup %1940  ;;  %v1414_v32 = vadd.f32 1.0, %v1939_v18 }
  0xc4   : > { %v1943_v23 = vpop.eup %1942  ;;  %v1415_v36 = vadd.f32 1.0, %v1941_v20  ;;  %1952 = vrcp.f32 %v1413_v27 }
  0xc5   : > { %v1416_v40 = vadd.f32 1.0, %v1943_v23  ;;  %1954 = vrcp.f32 %v1414_v32  ;;  %v1945_v48 = vpop.eup %1944 }
  0xc6   : > { %1956 = vrcp.f32 %v1415_v36  ;;  %v1445_v9 = vadd.f32 1.0, %v1945_v48 }
  0xc7   : > { %1958 = vrcp.f32 %v1416_v40 }
 0x160   : > { %v640_v44 = vpop.f32.mrb[0].mxu1 }
 0x161   : > { %v642_v53 = vpop.f32.mrb[1].mxu1 }
 0x162   : > { %v644_v55 = vpop.f32.mrb[2].mxu1 }
 0x163   : > { %v646_v58 = vpop.f32.mrb[3].mxu1 }
 0x16e   : > { %v1274_v49 = vpop.f32.mrb[0].mxu0 }
 0x16f   : > { %v1719_v15 = vadd.f32 %v1274_v49, %v640_v44  ;;  %v1276_v19 = vpop.f32.mrb[1].mxu0  ;;  %v1947_v44 = vpop.eup %1946 }
 0x170   : > { %v1720_v21 = vadd.f32 %v1276_v19, %v642_v53  ;;  %v1278_v22 = vpop.f32.mrb[2].mxu0  ;;  %v1949_v56 = vpop.eup %1948  ;;  %v1446_v3 = vadd.f32 1.0, %v1947_v44 }
 0x171   : > { %v1327_v24 = vadd.f32 %v1719_v15, %v2393_v16  ;;  %v1721_v0 = vadd.f32 %v1278_v22, %v644_v55  ;;  %v1280_v26 = vpop.f32.mrb[3].mxu0  ;;  %v1951_v60 = vpop.eup %1950  ;;  %v1447_v7 = vadd.f32 1.0, %v1949_v56 }
 0x172   : > { %v1328_v29 = vadd.f32 %v1720_v21, %v2395_v8  ;;  %v1722_v31 = vadd.f32 %v1280_v26, %v646_v58  ;;  %v1448_v28 = vadd.f32 1.0, %v1951_v60  ;;  %v1953_v49 = vpop.eup %1952 }
 0x173   : > { %v1339_v33 = vmax.f32 %v1327_v24, 0.0  ;;  %v1329_v34 = vadd.f32 %v1721_v0, %v2393_v16  ;;  %v1955_v21 = vpop.eup %1954 }
 0x174   : > { %v1340_v37 = vmax.f32 %v1328_v29, 0.0  ;;  %v1330_v38 = vadd.f32 %v1722_v31, %v2395_v8  ;;  %v1957_v0 = vpop.eup %1956 }
 0x175   : > { %v1453_v41 = vmul.f32 %v1441_v25, %v1339_v33  ;;  %v1341_v43 = vmax.f32 %v1329_v34, 0.0  ;;  %v1959_v32 = vpop.eup %1958  ;;  %v1449_v34 = vadd.f32 1.0, %v1953_v49 }
 0x176   : > { %v1454_v45 = vmul.f32 %v1442_v30, %v1340_v37  ;;  %v1342_v46 = vmax.f32 %v1330_v38, 0.0  ;;  %v1284_v47 = vpop.f32.mrb[4].mxu0  ;;  %v1452_v48 = vadd.f32 1.0, %v1959_v32 }
 0x177   : > { %v1455_v50 = vmul.f32 %v1443_v35, %v1341_v43  ;;  %v1286_v42 = vpop.f32.mrb[5].mxu0 }
 0x178   : > { %v800_v51 = vpop.f32.mrb[4].mxu1  ;;  %v1711_v52 = vpack.c.bf16 %v1454_v45, %v1453_v41  ;;  %v1456_v11 = vmul.f32 %v1444_v39, %v1342_v46  ;;  %v1288_v53 = vpop.f32.mrb[6].mxu0  ;;  %v1450_v39 = vadd.f32 1.0, %v1955_v21  ;;  %v1451_v45 = vadd.f32 1.0, %v1957_v0 }
 0x179   : > { %v1723_v54 = vadd.f32 %v1284_v47, %v800_v51  ;;  %v802_v55 = vpop.f32.mrb[5].mxu1  ;;  %v1290_v57 = vpop.f32.mrb[7].mxu0 }
 0x17a   : > { %v1724_v58 = vadd.f32 %v1286_v42, %v802_v55  ;;  %v804_v59 = vpop.f32.mrb[6].mxu1  ;;  %1501 = vst [vmem:[%s2407_s12] sm:$0xff] %v1711_v52  ;;  %v1712_v61 = vpack.c.bf16 %v1456_v11, %v1455_v50 }
 0x17b   : > { %v1331_v62 = vadd.f32 %v1723_v54, %v2393_v16  ;;  %v1725_v63 = vadd.f32 %v1288_v53, %v804_v59  ;;  %v806_v1 = vpop.f32.mrb[7].mxu1 }
 0x17c   : > { %v1332_v2 = vadd.f32 %v1724_v58, %v2395_v8  ;;  %v1726_v12 = vadd.f32 %v1290_v57, %v806_v1  ;;  %1502 = vst [vmem:[%s2407_s12 + $0x8] sm:$0xff] %v1712_v61 }
 0x17d   : > { %v1343_v4 = vmax.f32 %v1331_v62, 0.0  ;;  %v1333_v5 = vadd.f32 %v1725_v63, %v2393_v16 }
 0x17e   : > { %v1344_v10 = vmax.f32 %v1332_v2, 0.0  ;;  %v1334_v13 = vadd.f32 %v1726_v12, %v2395_v8  ;;  %v1294_v17 = vpop.f32.mrb[8].mxu0 }
 0x17f   : > { %v1457_v14 = vmul.f32 %v1445_v9, %v1343_v4  ;;  %v1345_v6 = vmax.f32 %v1333_v5, 0.0  ;;  %v1296_v19 = vpop.f32.mrb[9].mxu0 }
 0x180   : > { %v1458_v18 = vmul.f32 %v1446_v3, %v1344_v10  ;;  %v1346_v15 = vmax.f32 %v1334_v13, 0.0  ;;  %v810_v20 = vpop.f32.mrb[8].mxu1  ;;  %v1298_v23 = vpop.f32.mrb[10].mxu0 }
 0x181   : > { %v1459_v22 = vmul.f32 %v1447_v7, %v1345_v6  ;;  %v1727_v24 = vadd.f32 %v1294_v17, %v810_v20  ;;  %v812_v25 = vpop.f32.mrb[9].mxu1  ;;  %v1300_v29 = vpop.f32.mrb[11].mxu0 }
 0x182   : > { %v1713_v26 = vpack.c.bf16 %v1458_v18, %v1457_v14  ;;  %v1460_v27 = vmul.f32 %v1448_v28, %v1346_v15  ;;  %v1728_v30 = vadd.f32 %v1296_v19, %v812_v25  ;;  %v814_v31 = vpop.f32.mrb[10].mxu1 }
 0x183   : > { %v1335_v33 = vadd.f32 %v1727_v24, %v2393_v16  ;;  %v1729_v35 = vadd.f32 %v1298_v23, %v814_v31  ;;  %v816_v36 = vpop.f32.mrb[11].mxu1 }
 0x184   : > { %1503 = vst [vmem:[%s2407_s12 + $0x10] sm:$0xff] %v1713_v26  ;;  %v1714_v37 = vpack.c.bf16 %v1460_v27, %v1459_v22  ;;  %v1336_v38 = vadd.f32 %v1728_v30, %v2395_v8  ;;  %v1730_v40 = vadd.f32 %v1300_v29, %v816_v36 }
 0x185   : > { %v1347_v41 = vmax.f32 %v1335_v33, 0.0  ;;  %v1337_v43 = vadd.f32 %v1729_v35, %v2393_v16 }
 0x186   : > { %1504 = vst [vmem:[%s2407_s12 + $0x18] sm:$0xff] %v1714_v37  ;;  %v1348_v46 = vmax.f32 %v1336_v38, 0.0  ;;  %v1338_v47 = vadd.f32 %v1730_v40, %v2395_v8 }
 0x187   : > { %v1461_v50 = vmul.f32 %v1449_v34, %v1347_v41  ;;  %v1349_v42 = vmax.f32 %v1337_v43, 0.0 }
 0x188   : > { %v1462_v51 = vmul.f32 %v1450_v39, %v1348_v46  ;;  %v1350_v44 = vmax.f32 %v1338_v47, 0.0 }
 0x189   : > { %v1463_v52 = vmul.f32 %v1451_v45, %v1349_v42 }
 0x18a   : > { %v1715_v11 = vpack.c.bf16 %v1462_v51, %v1461_v50  ;;  %v1464_v53 = vmul.f32 %v1452_v48, %v1350_v44 }
 0x18c   : > { %1505 = vst [vmem:[%s2407_s12 + $0x20] sm:$0xff] %v1715_v11  ;;  %v1716_v16 = vpack.c.bf16 %v1464_v53, %v1463_v52 }
 0x18e   : > { %1506 = vst [vmem:[%s2407_s12 + $0x28] sm:$0xff] %v1716_v16 }
 0x18f   : > { %2001 = shalt.err (!%p1998_p7)
}
 0x190   : > { %s2002_s5 = scalar_lea.hbm %s2429_s23, 768  ;;  %s2006_s8 = scalar_lea.hbm %s2479_s4, 3072 }
 0x191   : > { %p2003_p8 = scmp.ne.s32.totalorder %s2429_s23, %s2002_s5  ;;  %p2007_p1 = scmp.lt.u32.totalorder %s2429_s23, %s2479_s4 }
 0x192   : > { %p2008_p0 = scmp.lt.u32.totalorder %s2006_s8, %s2002_s5  ;;  %p2010_p6 = scmp.lt.u32.totalorder %s2002_s5, %s2429_s23 }
 0x193   : > { %p2004_p11 = pnand %p2003_p8, %p2490_p9 }
 0x194   : > { %p2009_p5 = por %p2008_p0, %p2007_p1 }
 0x195   : > { %p2005_p13 = pneg %p2004_p11 }
 0x196   : > { %p2011_p10 = por %p2010_p6, %p2009_p5 }
 0x198   : > { %p2012_p12 = pnand %p2011_p10, %p2005_p13 }
 0x19a   : > { %2015 = shalt.err (!%p2012_p12)
}
 0x19b   : > { %s2061_s11 = smov 128   ;;  %s2062_s12 = smov 8  }
 0x19c   : > { %1822 = dma.vmem_to_hbm [thread:$0]  (%p2490_p9), %s2423_s14, 768, %s2429_s23, %s2434_s27, %s2061_s11, %s2061_s11, %s2062_s12  }
 0x19d PF: > { %p1834_p2 = scmp.ge.s32.totalorder %s2054_s18, 2  ;;  %s1536_s13 = sand.u32 1, %s2042_s15  }
 0x19e   : > { %p2491_p3 = scmp.ne.s32.totalorder %s2484_s26, 0  ;;  %s1537_s20 = scalar_lea.sflag [#allocation4], %s1536_s13 }
 0x1a0   : > { %p1829_p4 = pnand %p1834_p2, %p2491_p3 }
 0x1a2   : > { %2037 = dma.done.wait (!%p1829_p4), %s1537_s20, 768  }
 0x1a3   : > { %2039 = vsyncadd (!%p1829_p4), %s1537_s20, 4294966528  ;;  %p15_p7 = scmp.ge.s32.totalorder %s2113_s21, 6   ;;  %s2492_s15 = smov %s2046_s16 }
 0x1a4   : > { %s2493_s16 = smov %s2050_s17  ;;  %s2494_s17 = smov %s2124_s24 }
 0x1a5   : > { %s2495_s18 = smov %s2113_s21  ;;  %17 = sbr.rel (!%p15_p7) target bundleno = 4 (0x4), region = 87 }
 0x1ac   :  { %1542 = vsyncpa [#allocation3], 1 }
 0x1ad   :  { %1544 = vsyncpa [#allocation3 + $0x1], 1 }
 0x1ae   :  { %1545 = vsyncpa [#allocation4], 1 }
 0x1af   :  { %1547 = vsyncpa [#allocation4 + $0x1], 1 }

// kernel: tpu_custom_call.1
= control target key start
LH: loop header
LB: loop body
LE: loop exit
PB: predicated region body
PF: predicated region fallthrough
CT: control target
= control target key end

     0   :  { %vm99_vm0 = vcmask 293888   ;;  %vm124_vm1 = vcmask 1041408   ;;  %s594_s0 = inlined_call_operand.vmem [shape: bf16[1,128,36], index: 0, kind: input, shape index: {}]   ;;  %s595_s1 = inlined_call_operand.vmem [shape: bf16[1,36,128], index: 1, kind: input, shape index: {}]   ;;  %s596_s2 = inlined_call_operand.vmem [shape: f32[1,128], index: 2, kind: input, shape index: {}]   ;;  %s597_s3 = inlined_call_operand.hbm [shape: bf16[1,128,128], index: 3, kind: output, shape index: {}]  }
   0x1   :  { %v480_v0 = vld [vmem:[%s595_s1] sm:$0xff]   ;;  %v481_v1 = vld [vmem:[%s595_s1 + $0x8] sm:$0xff]   ;;  %v482_v2 = vld [vmem:[%s595_s1 + $0x10] ss:$0 sps:$4 sm:$0x33]  }
   0x2   :  { %447 = vmatprep.subr.bf16.mxu0 %v480_v0  ;;  %469 = vmatprep.subr.bf16.mxu1 %v480_v0  ;;  %v483_v3 = vld [vmem:[%s594_s0] sm:$0xff]   ;;  %v126_v5 = vsel %vm124_vm1, %v482_v2, 0  ;;  %v485_v6 = vld [vmem:[%s594_s0 + $0x8] sm:$0xff]  }
   0x3   :  { %448 = vmatpush3.bf16.msra.mxu0 %v480_v0  ;;  %472 = vmatpush3.bf16.msra.mxu1 %v480_v0  ;;  %v484_v4 = vld [vmem:[%s594_s0 + $0x20] sm:$0xff]   ;;  %v486_v7 = vld [vmem:[%s594_s0 + $0x28] sm:$0xff]  }
   0x4   :  { %449 = vmatprep.subr.bf16.mxu0 %v481_v1  ;;  %470 = vmatprep.subr.bf16.mxu1 %v481_v1 }
   0x5   :  { %453 = vmatprep.mubr.msk.bf16.mxu0 %vm99_vm0, %v483_v3  ;;  %461 = vmatprep.mubr.msk.bf16.mxu1 %vm99_vm0, %v484_v4 }
   0x7   :  { %450 = vmatpush3.bf16.msra.mxu0 %v481_v1  ;;  %473 = vmatpush3.bf16.msra.mxu1 %v481_v1 }
   0x8   :  { %475 = vmatprep.subr.msk.bf16.mxu0 %vm124_vm1, %v482_v2  ;;  %476 = vmatprep.subr.msk.bf16.mxu1 %vm124_vm1, %v482_v2 }
   0x9   :  { %8 = vsyncpa [#allocation3], 0  ;;  %v487_v8 = vld [vmem:[%s594_s0 + $0x10] sm:$0xff]   ;;  %v489_v10 = vld [vmem:[%s594_s0 + $0x18] sm:$0xff]  }
   0xa   :  { %v488_v9 = vld [vmem:[%s594_s0 + $0x30] sm:$0xff]   ;;  %v490_v11 = vld [vmem:[%s594_s0 + $0x38] sm:$0xff]   ;;  %v337_v12 = vld [vmem:[%s596_s2] ss:$0 sm:$0xff]  ;;  %s515_s0 = smov [#allocation2]  }
   0xb   :  { %452 = vmatpush3.bf16.msra.mxu0 %v126_v5  ;;  %474 = vmatpush3.bf16.msra.mxu1 %v126_v5  ;;  %s326_s2 = sshll.u32 %s515_s0, 4  ;;  %s327_s2 = int_to_ptr.vmem [resolvable:$true] %s326_s2 }
   0xc   :  { %s491_s8 = scalar_lea.vmem %s327_s2, 1024  ;;  %p496_p1 = scmp.lt.s32.totalorder %s327_s2, %s327_s2 }
   0xd   :  { %p492_p0 = scmp.ne.s32.totalorder %s327_s2, %s491_s8  ;;  %p497_p2 = scmp.lt.s32.totalorder %s491_s8, %s491_s8 }
   0xe   :  { %454 = vmatmul.mubr.msk.bf16.vlgmr.msra.gmra.mrb[0].mxu0 %vm99_vm0, %v485_v6  ;;  %462 = vmatmul.mubr.msk.bf16.vlgmr.msra.gmra.mrb[0].mxu1 %vm99_vm0, %v486_v7 }
   0xf   :  { %457 = vmatprep.mubr.msk.bf16.mxu0 %vm99_vm0, %v487_v8  ;;  %465 = vmatprep.mubr.msk.bf16.mxu1 %vm99_vm0, %v488_v9  ;;  %p498_p3 = por %p497_p2, %p496_p1 }
  0x11   :  { %p499_p4 = pnand %p498_p3, %p492_p0 }
  0x16   :  { %458 = vmatmul.mubr.msk.bf16.gmra.mrb[4].mxu0 %vm99_vm0, %v489_v10  ;;  %466 = vmatmul.mubr.msk.bf16.gmra.mrb[4].mxu1 %vm99_vm0, %v490_v11 }
  0xe1   :  { %v455_v13 = vpop.f32.mrb[0].mxu0  ;;  %v463_v14 = vpop.f32.mrb[0].mxu1 }
  0xe2   :  { %v171_v15 = vadd.f32 %v455_v13, %v337_v12  ;;  %v203_v16 = vadd.f32 %v463_v14, %v337_v12  ;;  %v162_v17 = vpop.f32.mrb[1].mxu0  ;;  %v194_v18 = vpop.f32.mrb[1].mxu1 }
  0xe3   :  { %v163_v19 = vadd.f32 %v337_v12, %v162_v17  ;;  %v195_v20 = vadd.f32 %v337_v12, %v194_v18  ;;  %v456_v21 = vpop.f32.mrb[2].mxu0  ;;  %v464_v22 = vpop.f32.mrb[2].mxu1 }
  0xe4   :  { %v174_v23 = vadd.f32 %v456_v21, %v337_v12  ;;  %v206_v24 = vadd.f32 %v464_v22, %v337_v12  ;;  %v165_v25 = vpop.f32.mrb[3].mxu0  ;;  %v197_v26 = vpop.f32.mrb[3].mxu1  ;;  %v227_v29 = vmax.f32 %v171_v15, 0.0  ;;  %v235_v30 = vmax.f32 %v203_v16, 0.0 }
  0xe5   :  { %v166_v27 = vadd.f32 %v337_v12, %v165_v25  ;;  %v198_v28 = vadd.f32 %v337_v12, %v197_v26  ;;  %v225_v33 = vmax.f32 %v163_v19, 0.0  ;;  %v233_v34 = vmax.f32 %v195_v20, 0.0 }
  0xe6   :  { %v228_v31 = vmax.f32 %v174_v23, 0.0  ;;  %v236_v32 = vmax.f32 %v206_v24, 0.0 }
  0xe7   :  { %v226_v35 = vmax.f32 %v166_v27, 0.0  ;;  %v234_v36 = vmax.f32 %v198_v28, 0.0 }
  0xe8   :  { %v397_v37 = vpack.c.bf16 %v228_v31, %v227_v29  ;;  %v417_v38 = vpack.c.bf16 %v236_v32, %v235_v30 }
  0xe9   :  { %v392_v39 = vpack.c.bf16 %v226_v35, %v225_v33  ;;  %v412_v40 = vpack.c.bf16 %v234_v36, %v233_v34  ;;  %v459_v41 = vpop.f32.mrb[4].mxu0  ;;  %v467_v42 = vpop.f32.mrb[4].mxu1 }
  0xea   :  { %429 = vst [vmem:[#allocation2 + $0x8] sm:$0xff] %v397_v37   ;;  %433 = vst [vmem:[#allocation2 + $0x28] sm:$0xff] %v417_v38   ;;  %v187_v43 = vadd.f32 %v459_v41, %v337_v12  ;;  %v219_v44 = vadd.f32 %v467_v42, %v337_v12  ;;  %v178_v45 = vpop.f32.mrb[5].mxu0  ;;  %v210_v46 = vpop.f32.mrb[5].mxu1 }
  0xeb   :  { %393 = vst [vmem:[#allocation2] sm:$0xff] %v392_v39   ;;  %432 = vst [vmem:[#allocation2 + $0x20] sm:$0xff] %v412_v40   ;;  %v179_v47 = vadd.f32 %v337_v12, %v178_v45  ;;  %v211_v48 = vadd.f32 %v337_v12, %v210_v46  ;;  %v460_v49 = vpop.f32.mrb[6].mxu0  ;;  %v468_v50 = vpop.f32.mrb[6].mxu1 }
  0xec   :  { %v190_v51 = vadd.f32 %v460_v49, %v337_v12  ;;  %v222_v52 = vadd.f32 %v468_v50, %v337_v12  ;;  %v181_v53 = vpop.f32.mrb[7].mxu0  ;;  %v213_v54 = vpop.f32.mrb[7].mxu1  ;;  %v231_v57 = vmax.f32 %v187_v43, 0.0  ;;  %v239_v58 = vmax.f32 %v219_v44, 0.0 }
  0xed   :  { %v182_v55 = vadd.f32 %v337_v12, %v181_v53  ;;  %v214_v56 = vadd.f32 %v337_v12, %v213_v54  ;;  %v229_v61 = vmax.f32 %v179_v47, 0.0  ;;  %v237_v62 = vmax.f32 %v211_v48, 0.0 }
  0xee   :  { %v232_v59 = vmax.f32 %v190_v51, 0.0  ;;  %v240_v60 = vmax.f32 %v222_v52, 0.0 }
  0xef   :  { %v230_v63 = vmax.f32 %v182_v55, 0.0  ;;  %v238_v0 = vmax.f32 %v214_v56, 0.0 }
  0xf0   :  { %v407_v1 = vpack.c.bf16 %v232_v59, %v231_v57  ;;  %v427_v2 = vpack.c.bf16 %v240_v60, %v239_v58 }
  0xf1   :  { %v402_v3 = vpack.c.bf16 %v230_v63, %v229_v61  ;;  %v422_v4 = vpack.c.bf16 %v238_v0, %v237_v62 }
  0xf2   :  { %431 = vst [vmem:[#allocation2 + $0x18] sm:$0xff] %v407_v1   ;;  %435 = vst [vmem:[#allocation2 + $0x38] sm:$0xff] %v427_v2  }
  0xf3   :  { %430 = vst [vmem:[#allocation2 + $0x10] sm:$0xff] %v402_v3   ;;  %434 = vst [vmem:[#allocation2 + $0x30] sm:$0xff] %v422_v4  }
  0xf4   :  { %502 = shalt.err (!%p499_p4)
}
  0xf5   :  { %s503_s11 = scalar_lea.hbm %s597_s3, 1024 }
  0xf6   :  { %p504_p5 = scmp.ne.s32.totalorder %s597_s3, %s503_s11  ;;  %p507_p6 = scmp.lt.u32.totalorder %s503_s11, %s597_s3 }
  0xf8   :  { %p509_p7 = pnand %p507_p6, %p504_p5 }
  0xfa   :  { %512 = shalt.err (!%p509_p7)
}
  0xfb   :  { %s516_s16 = smov 64   ;;  %s517_s17 = smov 4  }
  0xfc   :  { %332 = dma.vmem_to_hbm [thread:$0]  %s327_s2, 1024, %s597_s3, [#allocation3], %s516_s16, %s516_s16, %s517_s17  }
  0xfd   :  { %513 = dma.done.wait [#allocation3], 1024  }
  0xfe   :  { %514 = vsyncadd [#allocation3], 4294966272 }
  0xff   :  { %336 = vsyncpa [#allocation3], 1 }

</bundles_post_ra>
